<compile_context>
chip_gen: v7x
topology: tpu7x:2x2x1
jax: 0.10.0
libtpu: 0.0.40
codegen_flags: <defaults>
</compile_context>

<pallas_src>
import functools
import math

import jax
import jax.numpy as jnp
from jax.experimental import pallas as pl
from jax.experimental.pallas import tpu as pltpu

EPS = 1e-5
LANE = 128   # lane width: final logits are padded to a lane-dense last dim and sliced in the wrapper


def _layernorm(x, gamma, beta):
    mean = jnp.mean(x, axis=-1, keepdims=True)
    var = jnp.mean(jnp.square(x - mean), axis=-1, keepdims=True)
    return (x - mean) * jax.lax.rsqrt(var + EPS) * gamma + beta


# -----------------------------------------------------------------------------
# One fused kernel: input LN + projection, all encoder layers, mean-pool + head.
# grid = (batch_tiles ["parallel"], n_layers ["arbitrary"]); the activation x lives
# in a VMEM scratch for the whole layer loop (no HBM round trips between layers).
# -----------------------------------------------------------------------------
def _fused_encoder_kernel(
        x_ref,                       # (bt, S, F)   input features
        ln_g_ref, ln_b_ref,          # (1, F)       input LayerNorm params (f32)
        proj_w_ref, proj_b_ref,      # (F, D) bf16 / (1, D) f32
        qkv_w_ref, qkv_b_ref,        # (1, 3, D, D) bf16 / (1, 3, D) f32   (current layer)
        wo_ref, o_bias_ref,          # (1, H, hd, D) bf16 / (1, 1, D) f32
        ln1_g_ref, ln1_b_ref,        # (1, 1, D) f32
        w1_ref, b1_ref,              # (1, D, Fff) bf16 / (1, 1, Fff) f32
        w2_ref, b2_ref,              # (1, Fff, D) bf16 / (1, 1, D) f32
        ln2_g_ref, ln2_b_ref,        # (1, 1, D) f32
        head_w_ref, head_b_ref,      # (D, Lpad) bf16 / (1, Lpad) f32
        out_ref,                     # (1, bt, Lpad) f32
        x_vmem,                      # scratch (bt*S, D) f32 — resident activations
        *, n_head):
    layer = pl.program_id(1)
    n_layers = pl.num_programs(1)

    bt, S, F = x_ref.shape
    D = proj_w_ref.shape[1]
    hd = D // n_head
    R = bt * S
    scale = 1.0 / math.sqrt(hd)

    # ---------------- prologue (layer 0): LayerNorm(n_features) + input projection ----------------
    @pl.when(layer == 0)
    def _():
        x_in = x_ref[...].astype(jnp.float32).reshape(R, F)
        xn = _layernorm(x_in, ln_g_ref[0], ln_b_ref[0])
        x_vmem[...] = (jnp.dot(xn.astype(jnp.bfloat16), proj_w_ref[...],
                               preferred_element_type=jnp.float32) + proj_b_ref[0])

    # ---------------- one post-norm TransformerEncoderLayer (norm_first=False, ReLU FFN) ----------
    x = x_vmem[...]                                     # (R, D) f32
    x_bf = x.astype(jnp.bfloat16)

    qkv_w = qkv_w_ref[0]                                # (3, D, D) bf16 (leading-axis ref slice)
    qkv_b = qkv_b_ref[0]                                # (3, D)    f32
    # Q/K/V: three full-width (R, D) x (D, D) matmuls — batch rows folded for MXU fill.
    q = jnp.dot(x_bf, qkv_w[0], preferred_element_type=jnp.float32) + qkv_b[0]
    k = jnp.dot(x_bf, qkv_w[1], preferred_element_type=jnp.float32) + qkv_b[1]
    v = jnp.dot(x_bf, qkv_w[2], preferred_element_type=jnp.float32) + qkv_b[2]

    wo = wo_ref[0]                                      # (H, hd, D) bf16  (out-proj split per head)
    attn_rows = []
    for b in range(bt):                                 # static, small batch tile
        rs = b * S

        def _to_heads(t, rs=rs):
            # (S, D) -> (H, S, hd); head split kept as static slices + leading-axis stack.
            return jnp.stack([t[rs:rs + S, h * hd:(h + 1) * hd] for h in range(n_head)],
                             axis=0).astype(jnp.bfloat16)

        qh = _to_heads(q)                               # (H, S, hd) bf16
        kh = _to_heads(k)
        vh = _to_heads(v)

        # batched-over-heads attention core (no per-head Python matmuls, no lane concatenate)
        s = jnp.einsum('hqd,hkd->hqk', qh, kh,
                       preferred_element_type=jnp.float32) * scale           # (H, S, S) f32
        s = s - jnp.max(s, axis=-1, keepdims=True)
        p = jnp.exp(s)
        p = p * pl.reciprocal(jnp.sum(p, axis=-1, keepdims=True), approx=True)
        oh = jnp.einsum('hqk,hkd->hqd', p.astype(jnp.bfloat16), vh,
                        preferred_element_type=jnp.float32)                  # (H, S, hd)
        # per-head output projection, summed over heads (replaces concat + single (D,D) matmul)
        ph = jnp.einsum('hqd,hde->hqe', oh.astype(jnp.bfloat16), wo,
                        preferred_element_type=jnp.float32)                  # (H, S, D)
        attn_rows.append(jnp.sum(ph, axis=0))                                # (S, D)

    attn = attn_rows[0] if bt == 1 else jnp.concatenate(attn_rows, axis=0)   # (R, D)
    attn = attn + o_bias_ref[0]

    h1 = _layernorm(x + attn, ln1_g_ref[0], ln1_b_ref[0])

    f = jnp.dot(h1.astype(jnp.bfloat16), w1_ref[0],
                preferred_element_type=jnp.float32) + b1_ref[0]
    f = jnp.maximum(f, 0.0)
    f = jnp.dot(f.astype(jnp.bfloat16), w2_ref[0],
                preferred_element_type=jnp.float32) + b2_ref[0]

    h2 = _layernorm(h1 + f, ln2_g_ref[0], ln2_b_ref[0])
    x_vmem[...] = h2

    # ---------------- epilogue (last layer): mean-pool over S + classification head ---------------
    @pl.when(layer == n_layers - 1)
    def _():
        xf = x_vmem[...]                                                     # (R, D) f32
        pooled = [jnp.mean(xf[b * S:(b + 1) * S], axis=0, keepdims=True) for b in range(bt)]
        pooled = pooled[0] if bt == 1 else jnp.concatenate(pooled, axis=0)   # (bt, D)
        logits = jnp.dot(pooled.astype(jnp.bfloat16), head_w_ref[...],
                         preferred_element_type=jnp.float32) + head_b_ref[0]  # (bt, Lpad) lane-dense
        out_ref[0] = logits.astype(out_ref.dtype)


# -----------------------------------------------------------------------------
# Parameter construction (deterministic, synthetic) — weights stacked per layer.
# -----------------------------------------------------------------------------
def init_params(key, n_features, d_model, n_head, dim_ff, n_layers, num_labels):
    hd = d_model // n_head
    lpad = ((num_labels + LANE - 1) // LANE) * LANE

    def dense(k, shape, scale=0.05):
        return (scale * jax.random.normal(k, shape, dtype=jnp.float32)).astype(jnp.bfloat16)

    keys = jax.random.split(key, 7)
    head_w = jnp.zeros((d_model, lpad), jnp.bfloat16)
    head_w = head_w.at[:, :num_labels].set(dense(keys[1], (d_model, num_labels)))

    return {
        "ln_g": jnp.ones((1, n_features), jnp.float32),
        "ln_b": jnp.zeros((1, n_features), jnp.float32),
        "proj_w": dense(keys[0], (n_features, d_model)),             # = inp_proj.weight.T
        "proj_b": jnp.zeros((1, d_model), jnp.float32),
        # per-layer encoder weights, stacked on a leading layer axis:
        "qkv_w": dense(keys[2], (n_layers, 3, d_model, d_model)),    # = in_proj_weight[chunk].T
        "qkv_b": jnp.zeros((n_layers, 3, d_model), jnp.float32),
        "wo":    dense(keys[3], (n_layers, n_head, hd, d_model)),    # = out_proj.weight.T.reshape(H,hd,D)
        "ob":    jnp.zeros((n_layers, 1, d_model), jnp.float32),
        "ln1_g": jnp.ones((n_layers, 1, d_model), jnp.float32),
        "ln1_b": jnp.zeros((n_layers, 1, d_model), jnp.float32),
        "w1":    dense(keys[4], (n_layers, d_model, dim_ff)),
        "b1":    jnp.zeros((n_layers, 1, dim_ff), jnp.float32),
        "w2":    dense(keys[5], (n_layers, dim_ff, d_model)),
        "b2":    jnp.zeros((n_layers, 1, d_model), jnp.float32),
        "ln2_g": jnp.ones((n_layers, 1, d_model), jnp.float32),
        "ln2_b": jnp.zeros((n_layers, 1, d_model), jnp.float32),
        "head_w": head_w,                                            # lane-padded to 128
        "head_b": jnp.zeros((1, lpad), jnp.float32),
        "num_labels": num_labels,
    }


# -----------------------------------------------------------------------------
# Full forward: one fused pallas_call + plain-JAX cross-entropy (glue).
# -----------------------------------------------------------------------------
def llmixtic_forward(params, input_ids, n_head, labels=None, batch_tile=None):
    B, S, F = input_ids.shape
    n_layers, _, _, D = params["qkv_w"].shape
    Fff = params["w1"].shape[-1]
    lpad = params["head_w"].shape[-1]
    num_labels = params["num_labels"]
    hd = D // n_head

    if batch_tile is None:
        # keep >= 2 parallel grid steps when possible (keeps both v7x TensorCores busy),
        # otherwise fold the whole batch into one step.
        batch_tile = B // 2 if (B >= 2 and B % 2 == 0) else B
    assert B % batch_tile == 0
    bt = batch_tile
    n_bt = B // bt

    kern = functools.partial(_fused_encoder_kernel, n_head=n_head)

    # NOTE: at real d_model/dim_ff, add pipeline_mode=pl.Buffered(1) on the weight specs
    # (or K-tile the FFN matmuls) so double-buffered resident weights fit v7x's 64 MiB VMEM.
    out = pl.pallas_call(
        kern,
        out_shape=jax.ShapeDtypeStruct((n_bt, bt, lpad), jnp.float32),
        grid=(n_bt, n_layers),
        in_specs=[
            pl.BlockSpec((bt, S, F), lambda i, l: (i, 0, 0)),
            pl.BlockSpec((1, F), lambda i, l: (0, 0)),
            pl.BlockSpec((1, F), lambda i, l: (0, 0)),
            pl.BlockSpec((F, D), lambda i, l: (0, 0)),
            pl.BlockSpec((1, D), lambda i, l: (0, 0)),
            pl.BlockSpec((1, 3, D, D), lambda i, l: (l, 0, 0, 0)),
            pl.BlockSpec((1, 3, D), lambda i, l: (l, 0, 0)),
            pl.BlockSpec((1, n_head, hd, D), lambda i, l: (l, 0, 0, 0)),
            pl.BlockSpec((1, 1, D), lambda i, l: (l, 0, 0)),
            pl.BlockSpec((1, 1, D), lambda i, l: (l, 0, 0)),
            pl.BlockSpec((1, 1, D), lambda i, l: (l, 0, 0)),
            pl.BlockSpec((1, D, Fff), lambda i, l: (l, 0, 0)),
            pl.BlockSpec((1, 1, Fff), lambda i, l: (l, 0, 0)),
            pl.BlockSpec((1, Fff, D), lambda i, l: (l, 0, 0)),
            pl.BlockSpec((1, 1, D), lambda i, l: (l, 0, 0)),
            pl.BlockSpec((1, 1, D), lambda i, l: (l, 0, 0)),
            pl.BlockSpec((1, 1, D), lambda i, l: (l, 0, 0)),
            pl.BlockSpec((D, lpad), lambda i, l: (0, 0)),
            pl.BlockSpec((1, lpad), lambda i, l: (0, 0)),
        ],
        out_specs=pl.BlockSpec((1, bt, lpad), lambda i, l: (i, 0, 0)),
        scratch_shapes=[pltpu.VMEM((bt * S, D), jnp.float32)],
        compiler_params=pltpu.CompilerParams(
            dimension_semantics=("parallel", "arbitrary"),
            vmem_limit_bytes=48 * 1024 * 1024),
    )(input_ids,
      params["ln_g"], params["ln_b"], params["proj_w"], params["proj_b"],
      params["qkv_w"], params["qkv_b"], params["wo"], params["ob"],
      params["ln1_g"], params["ln1_b"], params["w1"], params["b1"],
      params["w2"], params["b2"], params["ln2_g"], params["ln2_b"],
      params["head_w"], params["head_b"])

    logits = out.reshape(B, lpad)[:, :num_labels]   # drop lane padding

    loss = None
    if labels is not None:
        # glue: cross-entropy (matches nn.CrossEntropyLoss mean reduction)
        logp = jax.nn.log_softmax(logits.reshape(-1, num_labels), axis=-1)
        loss = -jnp.mean(jnp.take_along_axis(logp, labels.reshape(-1, 1), axis=-1))
    return loss, logits


if __name__ == "__main__":
    # model_params / feature_params of the synthetic module (small test shapes)
    B, S = 2, 8
    n_features = 16
    d_model, n_head, dim_ff, n_layers, num_labels = 32, 4, 64, 2, 3

    key = jax.random.PRNGKey(0)
    k_par, k_inp, k_lab = jax.random.split(key, 3)
    params = init_params(k_par, n_features, d_model, n_head, dim_ff, n_layers, num_labels)

    input_ids = jax.random.normal(k_inp, (B, S, n_features), dtype=jnp.float32)
    labels = jax.random.randint(k_lab, (B,), 0, num_labels)

    loss, logits = llmixtic_forward(params, input_ids, n_head, labels=labels)
    jax.block_until_ready(logits)
    jax.block_until_ready(loss)
    assert logits.shape == (B, num_labels)
    print("KERNEL_OK")
</pallas_src>

<mosaic_0001>
module attributes {stable_mosaic.version = 11 : i64} {
  func.func @_fused_encoder_kernel(%arg0: i32, %arg1: i32, %arg2: memref<1x8x16xf32, #tpu.memory_space<vmem>>, %arg3: memref<1x16xf32, #tpu.memory_space<vmem>>, %arg4: memref<1x16xf32, #tpu.memory_space<vmem>>, %arg5: memref<16x32xbf16, #tpu.memory_space<vmem>>, %arg6: memref<1x32xf32, #tpu.memory_space<vmem>>, %arg7: memref<1x3x32x32xbf16, #tpu.memory_space<vmem>>, %arg8: memref<1x3x32xf32, #tpu.memory_space<vmem>>, %arg9: memref<1x4x8x32xbf16, #tpu.memory_space<vmem>>, %arg10: memref<1x1x32xf32, #tpu.memory_space<vmem>>, %arg11: memref<1x1x32xf32, #tpu.memory_space<vmem>>, %arg12: memref<1x1x32xf32, #tpu.memory_space<vmem>>, %arg13: memref<1x32x64xbf16, #tpu.memory_space<vmem>>, %arg14: memref<1x1x64xf32, #tpu.memory_space<vmem>>, %arg15: memref<1x64x32xbf16, #tpu.memory_space<vmem>>, %arg16: memref<1x1x32xf32, #tpu.memory_space<vmem>>, %arg17: memref<1x1x32xf32, #tpu.memory_space<vmem>>, %arg18: memref<1x1x32xf32, #tpu.memory_space<vmem>>, %arg19: memref<32x128xbf16, #tpu.memory_space<vmem>>, %arg20: memref<1x128xf32, #tpu.memory_space<vmem>>, %arg21: memref<1x1x128xf32, #tpu.memory_space<vmem>>, %arg22: memref<8x32xf32, #tpu.memory_space<vmem>>) attributes {dimension_semantics = [#tpu.dimension_semantics<parallel>, #tpu.dimension_semantics<arbitrary>], iteration_bounds = array<i64: 2, 2>, scalar_prefetch = 0 : i64, scratch_operands = 1 : i64, tpu.core_type = #tpu.core_type<tc>, window_params = [{transform_indices = @transform_0, window_bounds = array<i64: 1, 8, 16>}, {pipeline_mode = #tpu.pipeline_mode<synchronous>, transform_indices = @transform_1, window_bounds = array<i64: 1, 16>}, {pipeline_mode = #tpu.pipeline_mode<synchronous>, transform_indices = @transform_2, window_bounds = array<i64: 1, 16>}, {pipeline_mode = #tpu.pipeline_mode<synchronous>, transform_indices = @transform_3, window_bounds = array<i64: 16, 32>}, {pipeline_mode = #tpu.pipeline_mode<synchronous>, transform_indices = @transform_4, window_bounds = array<i64: 1, 32>}, {transform_indices = @transform_5, window_bounds = array<i64: 1, 3, 32, 32>}, {transform_indices = @transform_6, window_bounds = array<i64: 1, 3, 32>}, {transform_indices = @transform_7, window_bounds = array<i64: 1, 4, 8, 32>}, {transform_indices = @transform_8, window_bounds = array<i64: 1, 1, 32>}, {transform_indices = @transform_9, window_bounds = array<i64: 1, 1, 32>}, {transform_indices = @transform_10, window_bounds = array<i64: 1, 1, 32>}, {transform_indices = @transform_11, window_bounds = array<i64: 1, 32, 64>}, {transform_indices = @transform_12, window_bounds = array<i64: 1, 1, 64>}, {transform_indices = @transform_13, window_bounds = array<i64: 1, 64, 32>}, {transform_indices = @transform_14, window_bounds = array<i64: 1, 1, 32>}, {transform_indices = @transform_15, window_bounds = array<i64: 1, 1, 32>}, {transform_indices = @transform_16, window_bounds = array<i64: 1, 1, 32>}, {pipeline_mode = #tpu.pipeline_mode<synchronous>, transform_indices = @transform_17, window_bounds = array<i64: 32, 128>}, {pipeline_mode = #tpu.pipeline_mode<synchronous>, transform_indices = @transform_18, window_bounds = array<i64: 1, 128>}, {transform_indices = @transform_19, window_bounds = array<i64: 1, 1, 128>}]} {
    %c0_i32 = arith.constant 0 : i32
    %0 = arith.cmpi eq, %arg1, %c0_i32 : i32
    %1 = arith.extui %0 : i1 to i32
    %c0_i32_0 = arith.constant 0 : i32
    %2 = arith.cmpi ne, %1, %c0_i32_0 : i32
    scf.if %2 {
      %c0_65 = arith.constant 0 : index
      %c0_66 = arith.constant 0 : index
      %c0_67 = arith.constant 0 : index
      %163 = vector.load %arg2[%c0_65, %c0_66, %c0_67] : memref<1x8x16xf32, #tpu.memory_space<vmem>>, vector<1x8x16xf32>
      %164 = vector.shape_cast %163 : vector<1x8x16xf32> to vector<8x16xf32>
      %c0_68 = arith.constant 0 : index
      %c0_69 = arith.constant 0 : index
      %165 = vector.load %arg3[%c0_68, %c0_69] : memref<1x16xf32, #tpu.memory_space<vmem>>, vector<1x16xf32>
      %166 = vector.shape_cast %165 : vector<1x16xf32> to vector<16xf32>
      %c0_70 = arith.constant 0 : index
      %c0_71 = arith.constant 0 : index
      %167 = vector.load %arg4[%c0_70, %c0_71] : memref<1x16xf32, #tpu.memory_space<vmem>>, vector<1x16xf32>
      %168 = vector.shape_cast %167 : vector<1x16xf32> to vector<16xf32>
      %cst_72 = arith.constant dense<0.000000e+00> : vector<8xf32>
      %169 = vector.multi_reduction <add>, %164, %cst_72 [1] : vector<8x16xf32> to vector<8xf32>
      %170 = vector.shape_cast %169 : vector<8xf32> to vector<8x1xf32>
      %cst_73 = arith.constant 1.600000e+01 : f32
      %171 = vector.broadcast %cst_73 : f32 to vector<8x1xf32>
      %172 = arith.divf %170, %171 : vector<8x1xf32>
      %173 = vector.broadcast %172 : vector<8x1xf32> to vector<8x16xf32>
      %174 = arith.subf %164, %173 : vector<8x16xf32>
      %175 = arith.mulf %174, %174 : vector<8x16xf32>
      %cst_74 = arith.constant dense<0.000000e+00> : vector<8xf32>
      %176 = vector.multi_reduction <add>, %175, %cst_74 [1] : vector<8x16xf32> to vector<8xf32>
      %177 = vector.shape_cast %176 : vector<8xf32> to vector<8x1xf32>
      %cst_75 = arith.constant 1.600000e+01 : f32
      %178 = vector.broadcast %cst_75 : f32 to vector<8x1xf32>
      %179 = arith.divf %177, %178 : vector<8x1xf32>
      %180 = vector.broadcast %172 : vector<8x1xf32> to vector<8x16xf32>
      %181 = arith.subf %164, %180 : vector<8x16xf32>
      %cst_76 = arith.constant 9.99999974E-6 : f32
      %182 = vector.broadcast %cst_76 : f32 to vector<8x1xf32>
      %183 = arith.addf %179, %182 : vector<8x1xf32>
      %184 = math.rsqrt %183 : vector<8x1xf32>
      %185 = vector.broadcast %184 : vector<8x1xf32> to vector<8x16xf32>
      %186 = arith.mulf %181, %185 : vector<8x16xf32>
      %187 = vector.shape_cast %166 : vector<16xf32> to vector<1x16xf32>
      %188 = vector.broadcast %187 : vector<1x16xf32> to vector<8x16xf32>
      %189 = arith.mulf %186, %188 : vector<8x16xf32>
      %190 = vector.shape_cast %168 : vector<16xf32> to vector<1x16xf32>
      %191 = vector.broadcast %190 : vector<1x16xf32> to vector<8x16xf32>
      %192 = arith.addf %189, %191 : vector<8x16xf32>
      %193 = arith.truncf %192 : vector<8x16xf32> to vector<8x16xbf16>
      %c0_77 = arith.constant 0 : index
      %c0_78 = arith.constant 0 : index
      %194 = vector.load %arg5[%c0_77, %c0_78] : memref<16x32xbf16, #tpu.memory_space<vmem>>, vector<16x32xbf16>
      %cst_79 = arith.constant dense<0.000000e+00> : vector<8x32xf32>
      %195 = tpu.matmul %193, %194, %cst_79 {dimension_numbers = #tpu.dot_dimension_numbers<[1], [0], [0], [1], [0, 0, 1, 1], [], []>} : vector<8x16xbf16>, vector<16x32xbf16>, vector<8x32xf32> -> vector<8x32xf32>
      %c0_80 = arith.constant 0 : index
      %c0_81 = arith.constant 0 : index
      %196 = vector.load %arg6[%c0_80, %c0_81] : memref<1x32xf32, #tpu.memory_space<vmem>>, vector<1x32xf32>
      %197 = vector.shape_cast %196 : vector<1x32xf32> to vector<32xf32>
      %198 = vector.shape_cast %197 : vector<32xf32> to vector<1x32xf32>
      %199 = vector.broadcast %198 : vector<1x32xf32> to vector<8x32xf32>
      %200 = arith.addf %195, %199 : vector<8x32xf32>
      %c0_82 = arith.constant 0 : index
      %c0_83 = arith.constant 0 : index
      %201 = vector.load %arg22[%c0_82, %c0_83] : memref<8x32xf32, #tpu.memory_space<vmem>>, vector<8x32xf32>
      tpu.vector_store %arg22[%c0_82, %c0_83], %200 {strides = array<i32>} : memref<8x32xf32, #tpu.memory_space<vmem>>, vector<8x32xf32>,
    } else {
    }
    %c0 = arith.constant 0 : index
    %c0_1 = arith.constant 0 : index
    %3 = vector.load %arg22[%c0, %c0_1] : memref<8x32xf32, #tpu.memory_space<vmem>>, vector<8x32xf32>
    %4 = arith.truncf %3 : vector<8x32xf32> to vector<8x32xbf16>
    %c0_2 = arith.constant 0 : index
    %c0_3 = arith.constant 0 : index
    %c0_4 = arith.constant 0 : index
    %c0_5 = arith.constant 0 : index
    %5 = vector.load %arg7[%c0_2, %c0_3, %c0_4, %c0_5] : memref<1x3x32x32xbf16, #tpu.memory_space<vmem>>, vector<1x3x32x32xbf16>
    %6 = vector.shape_cast %5 : vector<1x3x32x32xbf16> to vector<3x32x32xbf16>
    %c0_6 = arith.constant 0 : index
    %c0_7 = arith.constant 0 : index
    %c0_8 = arith.constant 0 : index
    %7 = vector.load %arg8[%c0_6, %c0_7, %c0_8] : memref<1x3x32xf32, #tpu.memory_space<vmem>>, vector<1x3x32xf32>
    %8 = vector.shape_cast %7 : vector<1x3x32xf32> to vector<3x32xf32>
    %9 = vector.extract_strided_slice %6 {offsets = [0, 0, 0], sizes = [1, 32, 32], strides = [1, 1, 1]} : vector<3x32x32xbf16> to vector<1x32x32xbf16>
    %10 = vector.shape_cast %9 : vector<1x32x32xbf16> to vector<32x32xbf16>
    %cst = arith.constant dense<0.000000e+00> : vector<8x32xf32>
    %11 = tpu.matmul %4, %10, %cst {dimension_numbers = #tpu.dot_dimension_numbers<[1], [0], [0], [1], [0, 0, 1, 1], [], []>} : vector<8x32xbf16>, vector<32x32xbf16>, vector<8x32xf32> -> vector<8x32xf32>
    %12 = vector.extract_strided_slice %8 {offsets = [0, 0], sizes = [1, 32], strides = [1, 1]} : vector<3x32xf32> to vector<1x32xf32>
    %13 = vector.shape_cast %12 : vector<1x32xf32> to vector<32xf32>
    %14 = vector.shape_cast %13 : vector<32xf32> to vector<1x32xf32>
    %15 = vector.broadcast %14 : vector<1x32xf32> to vector<8x32xf32>
    %16 = arith.addf %11, %15 : vector<8x32xf32>
    %17 = vector.extract_strided_slice %6 {offsets = [1, 0, 0], sizes = [1, 32, 32], strides = [1, 1, 1]} : vector<3x32x32xbf16> to vector<1x32x32xbf16>
    %18 = vector.shape_cast %17 : vector<1x32x32xbf16> to vector<32x32xbf16>
    %cst_9 = arith.constant dense<0.000000e+00> : vector<8x32xf32>
    %19 = tpu.matmul %4, %18, %cst_9 {dimension_numbers = #tpu.dot_dimension_numbers<[1], [0], [0], [1], [0, 0, 1, 1], [], []>} : vector<8x32xbf16>, vector<32x32xbf16>, vector<8x32xf32> -> vector<8x32xf32>
    %20 = vector.extract_strided_slice %8 {offsets = [1, 0], sizes = [1, 32], strides = [1, 1]} : vector<3x32xf32> to vector<1x32xf32>
    %21 = vector.shape_cast %20 : vector<1x32xf32> to vector<32xf32>
    %22 = vector.shape_cast %21 : vector<32xf32> to vector<1x32xf32>
    %23 = vector.broadcast %22 : vector<1x32xf32> to vector<8x32xf32>
    %24 = arith.addf %19, %23 : vector<8x32xf32>
    %25 = vector.extract_strided_slice %6 {offsets = [2, 0, 0], sizes = [1, 32, 32], strides = [1, 1, 1]} : vector<3x32x32xbf16> to vector<1x32x32xbf16>
    %26 = vector.shape_cast %25 : vector<1x32x32xbf16> to vector<32x32xbf16>
    %cst_10 = arith.constant dense<0.000000e+00> : vector<8x32xf32>
    %27 = tpu.matmul %4, %26, %cst_10 {dimension_numbers = #tpu.dot_dimension_numbers<[1], [0], [0], [1], [0, 0, 1, 1], [], []>} : vector<8x32xbf16>, vector<32x32xbf16>, vector<8x32xf32> -> vector<8x32xf32>
    %28 = vector.extract_strided_slice %8 {offsets = [2, 0], sizes = [1, 32], strides = [1, 1]} : vector<3x32xf32> to vector<1x32xf32>
    %29 = vector.shape_cast %28 : vector<1x32xf32> to vector<32xf32>
    %30 = vector.shape_cast %29 : vector<32xf32> to vector<1x32xf32>
    %31 = vector.broadcast %30 : vector<1x32xf32> to vector<8x32xf32>
    %32 = arith.addf %27, %31 : vector<8x32xf32>
    %c0_11 = arith.constant 0 : index
    %c0_12 = arith.constant 0 : index
    %c0_13 = arith.constant 0 : index
    %c0_14 = arith.constant 0 : index
    %33 = vector.load %arg9[%c0_11, %c0_12, %c0_13, %c0_14] : memref<1x4x8x32xbf16, #tpu.memory_space<vmem>>, vector<1x4x8x32xbf16>
    %34 = vector.shape_cast %33 : vector<1x4x8x32xbf16> to vector<4x8x32xbf16>
    %35 = vector.extract_strided_slice %16 {offsets = [0, 0], sizes = [8, 8], strides = [1, 1]} : vector<8x32xf32> to vector<8x8xf32>
    %36 = vector.extract_strided_slice %16 {offsets = [0, 8], sizes = [8, 8], strides = [1, 1]} : vector<8x32xf32> to vector<8x8xf32>
    %37 = vector.extract_strided_slice %16 {offsets = [0, 16], sizes = [8, 8], strides = [1, 1]} : vector<8x32xf32> to vector<8x8xf32>
    %38 = vector.extract_strided_slice %16 {offsets = [0, 24], sizes = [8, 8], strides = [1, 1]} : vector<8x32xf32> to vector<8x8xf32>
    %39 = vector.shape_cast %35 : vector<8x8xf32> to vector<1x8x8xf32>
    %40 = vector.shape_cast %36 : vector<8x8xf32> to vector<1x8x8xf32>
    %41 = vector.shape_cast %37 : vector<8x8xf32> to vector<1x8x8xf32>
    %42 = vector.shape_cast %38 : vector<8x8xf32> to vector<1x8x8xf32>
    %43 = tpu.concatenate %39, %40, %41, %42 in 0 : vector<1x8x8xf32>, vector<1x8x8xf32>, vector<1x8x8xf32>, vector<1x8x8xf32> -> vector<4x8x8xf32>
    %44 = arith.truncf %43 : vector<4x8x8xf32> to vector<4x8x8xbf16>
    %45 = vector.extract_strided_slice %24 {offsets = [0, 0], sizes = [8, 8], strides = [1, 1]} : vector<8x32xf32> to vector<8x8xf32>
    %46 = vector.extract_strided_slice %24 {offsets = [0, 8], sizes = [8, 8], strides = [1, 1]} : vector<8x32xf32> to vector<8x8xf32>
    %47 = vector.extract_strided_slice %24 {offsets = [0, 16], sizes = [8, 8], strides = [1, 1]} : vector<8x32xf32> to vector<8x8xf32>
    %48 = vector.extract_strided_slice %24 {offsets = [0, 24], sizes = [8, 8], strides = [1, 1]} : vector<8x32xf32> to vector<8x8xf32>
    %49 = vector.shape_cast %45 : vector<8x8xf32> to vector<1x8x8xf32>
    %50 = vector.shape_cast %46 : vector<8x8xf32> to vector<1x8x8xf32>
    %51 = vector.shape_cast %47 : vector<8x8xf32> to vector<1x8x8xf32>
    %52 = vector.shape_cast %48 : vector<8x8xf32> to vector<1x8x8xf32>
    %53 = tpu.concatenate %49, %50, %51, %52 in 0 : vector<1x8x8xf32>, vector<1x8x8xf32>, vector<1x8x8xf32>, vector<1x8x8xf32> -> vector<4x8x8xf32>
    %54 = arith.truncf %53 : vector<4x8x8xf32> to vector<4x8x8xbf16>
    %55 = vector.extract_strided_slice %32 {offsets = [0, 0], sizes = [8, 8], strides = [1, 1]} : vector<8x32xf32> to vector<8x8xf32>
    %56 = vector.extract_strided_slice %32 {offsets = [0, 8], sizes = [8, 8], strides = [1, 1]} : vector<8x32xf32> to vector<8x8xf32>
    %57 = vector.extract_strided_slice %32 {offsets = [0, 16], sizes = [8, 8], strides = [1, 1]} : vector<8x32xf32> to vector<8x8xf32>
    %58 = vector.extract_strided_slice %32 {offsets = [0, 24], sizes = [8, 8], strides = [1, 1]} : vector<8x32xf32> to vector<8x8xf32>
    %59 = vector.shape_cast %55 : vector<8x8xf32> to vector<1x8x8xf32>
    %60 = vector.shape_cast %56 : vector<8x8xf32> to vector<1x8x8xf32>
    %61 = vector.shape_cast %57 : vector<8x8xf32> to vector<1x8x8xf32>
    %62 = vector.shape_cast %58 : vector<8x8xf32> to vector<1x8x8xf32>
    %63 = tpu.concatenate %59, %60, %61, %62 in 0 : vector<1x8x8xf32>, vector<1x8x8xf32>, vector<1x8x8xf32>, vector<1x8x8xf32> -> vector<4x8x8xf32>
    %64 = arith.truncf %63 : vector<4x8x8xf32> to vector<4x8x8xbf16>
    "tpu.trace_start"() <{level = 10 : i32, message = "hqd,hkd->hqk"}> : () -> ()
    %cst_15 = arith.constant dense<0.000000e+00> : vector<4x8x8xf32>
    %65 = tpu.matmul %44, %54, %cst_15 {dimension_numbers = #tpu.dot_dimension_numbers<[2], [2], [1], [1], [0, 0, 0, 1, 1, 1], [0], [0]>} : vector<4x8x8xbf16>, vector<4x8x8xbf16>, vector<4x8x8xf32> -> vector<4x8x8xf32>
    "tpu.trace_stop"() : () -> ()
    %cst_16 = arith.constant 0.353553385 : f32
    %66 = vector.broadcast %cst_16 : f32 to vector<4x8x8xf32>
    %67 = arith.mulf %65, %66 : vector<4x8x8xf32>
    %cst_17 = arith.constant dense<0xFF800000> : vector<4x8xf32>
    %68 = vector.multi_reduction <maximumf>, %67, %cst_17 [2] : vector<4x8x8xf32> to vector<4x8xf32>
    %69 = vector.shape_cast %68 : vector<4x8xf32> to vector<4x8x1xf32>
    %70 = vector.broadcast %69 : vector<4x8x1xf32> to vector<4x8x8xf32>
    %71 = arith.subf %67, %70 : vector<4x8x8xf32>
    %72 = math.exp %71 : vector<4x8x8xf32>
    %cst_18 = arith.constant dense<0.000000e+00> : vector<4x8xf32>
    %73 = vector.multi_reduction <add>, %72, %cst_18 [2] : vector<4x8x8xf32> to vector<4x8xf32>
    %74 = vector.shape_cast %73 : vector<4x8xf32> to vector<4x8x1xf32>
    %75 = tpu.reciprocal %74 {approx = true} : vector<4x8x1xf32> -> vector<4x8x1xf32>
    %76 = vector.broadcast %75 : vector<4x8x1xf32> to vector<4x8x8xf32>
    %77 = arith.mulf %72, %76 : vector<4x8x8xf32>
    %78 = arith.truncf %77 : vector<4x8x8xf32> to vector<4x8x8xbf16>
    "tpu.trace_start"() <{level = 10 : i32, message = "hqk,hkd->hqd"}> : () -> ()
    %cst_19 = arith.constant dense<0.000000e+00> : vector<4x8x8xf32>
    %79 = tpu.matmul %78, %64, %cst_19 {dimension_numbers = #tpu.dot_dimension_numbers<[2], [1], [1], [2], [0, 0, 0, 1, 1, 2], [0], [0]>} : vector<4x8x8xbf16>, vector<4x8x8xbf16>, vector<4x8x8xf32> -> vector<4x8x8xf32>
    "tpu.trace_stop"() : () -> ()
    %80 = arith.truncf %79 : vector<4x8x8xf32> to vector<4x8x8xbf16>
    "tpu.trace_start"() <{level = 10 : i32, message = "hqd,hde->hqe"}> : () -> ()
    %cst_20 = arith.constant dense<0.000000e+00> : vector<4x8x32xf32>
    %81 = tpu.matmul %80, %34, %cst_20 {dimension_numbers = #tpu.dot_dimension_numbers<[2], [1], [1], [2], [0, 0, 0, 1, 1, 2], [0], [0]>} : vector<4x8x8xbf16>, vector<4x8x32xbf16>, vector<4x8x32xf32> -> vector<4x8x32xf32>
    "tpu.trace_stop"() : () -> ()
    %cst_21 = arith.constant dense<0.000000e+00> : vector<8x32xf32>
    %82 = vector.multi_reduction <add>, %81, %cst_21 [0] : vector<4x8x32xf32> to vector<8x32xf32>
    %c0_22 = arith.constant 0 : index
    %c0_23 = arith.constant 0 : index
    %c0_24 = arith.constant 0 : index
    %83 = vector.load %arg10[%c0_22, %c0_23, %c0_24] : memref<1x1x32xf32, #tpu.memory_space<vmem>>, vector<1x1x32xf32>
    %84 = vector.shape_cast %83 : vector<1x1x32xf32> to vector<1x32xf32>
    %85 = vector.broadcast %84 : vector<1x32xf32> to vector<8x32xf32>
    %86 = arith.addf %82, %85 : vector<8x32xf32>
    %87 = arith.addf %3, %86 : vector<8x32xf32>
    %c0_25 = arith.constant 0 : index
    %c0_26 = arith.constant 0 : index
    %c0_27 = arith.constant 0 : index
    %88 = vector.load %arg11[%c0_25, %c0_26, %c0_27] : memref<1x1x32xf32, #tpu.memory_space<vmem>>, vector<1x1x32xf32>
    %89 = vector.shape_cast %88 : vector<1x1x32xf32> to vector<1x32xf32>
    %c0_28 = arith.constant 0 : index
    %c0_29 = arith.constant 0 : index
    %c0_30 = arith.constant 0 : index
    %90 = vector.load %arg12[%c0_28, %c0_29, %c0_30] : memref<1x1x32xf32, #tpu.memory_space<vmem>>, vector<1x1x32xf32>
    %91 = vector.shape_cast %90 : vector<1x1x32xf32> to vector<1x32xf32>
    %cst_31 = arith.constant dense<0.000000e+00> : vector<8xf32>
    %92 = vector.multi_reduction <add>, %87, %cst_31 [1] : vector<8x32xf32> to vector<8xf32>
    %93 = vector.shape_cast %92 : vector<8xf32> to vector<8x1xf32>
    %cst_32 = arith.constant 3.200000e+01 : f32
    %94 = vector.broadcast %cst_32 : f32 to vector<8x1xf32>
    %95 = arith.divf %93, %94 : vector<8x1xf32>
    %96 = vector.broadcast %95 : vector<8x1xf32> to vector<8x32xf32>
    %97 = arith.subf %87, %96 : vector<8x32xf32>
    %98 = arith.mulf %97, %97 : vector<8x32xf32>
    %cst_33 = arith.constant dense<0.000000e+00> : vector<8xf32>
    %99 = vector.multi_reduction <add>, %98, %cst_33 [1] : vector<8x32xf32> to vector<8xf32>
    %100 = vector.shape_cast %99 : vector<8xf32> to vector<8x1xf32>
    %cst_34 = arith.constant 3.200000e+01 : f32
    %101 = vector.broadcast %cst_34 : f32 to vector<8x1xf32>
    %102 = arith.divf %100, %101 : vector<8x1xf32>
    %103 = vector.broadcast %95 : vector<8x1xf32> to vector<8x32xf32>
    %104 = arith.subf %87, %103 : vector<8x32xf32>
    %cst_35 = arith.constant 9.99999974E-6 : f32
    %105 = vector.broadcast %cst_35 : f32 to vector<8x1xf32>
    %106 = arith.addf %102, %105 : vector<8x1xf32>
    %107 = math.rsqrt %106 : vector<8x1xf32>
    %108 = vector.broadcast %107 : vector<8x1xf32> to vector<8x32xf32>
    %109 = arith.mulf %104, %108 : vector<8x32xf32>
    %110 = vector.broadcast %89 : vector<1x32xf32> to vector<8x32xf32>
    %111 = arith.mulf %109, %110 : vector<8x32xf32>
    %112 = vector.broadcast %91 : vector<1x32xf32> to vector<8x32xf32>
    %113 = arith.addf %111, %112 : vector<8x32xf32>
    %114 = arith.truncf %113 : vector<8x32xf32> to vector<8x32xbf16>
    %c0_36 = arith.constant 0 : index
    %c0_37 = arith.constant 0 : index
    %c0_38 = arith.constant 0 : index
    %115 = vector.load %arg13[%c0_36, %c0_37, %c0_38] : memref<1x32x64xbf16, #tpu.memory_space<vmem>>, vector<1x32x64xbf16>
    %116 = vector.shape_cast %115 : vector<1x32x64xbf16> to vector<32x64xbf16>
    %cst_39 = arith.constant dense<0.000000e+00> : vector<8x64xf32>
    %117 = tpu.matmul %114, %116, %cst_39 {dimension_numbers = #tpu.dot_dimension_numbers<[1], [0], [0], [1], [0, 0, 1, 1], [], []>} : vector<8x32xbf16>, vector<32x64xbf16>, vector<8x64xf32> -> vector<8x64xf32>
    %c0_40 = arith.constant 0 : index
    %c0_41 = arith.constant 0 : index
    %c0_42 = arith.constant 0 : index
    %118 = vector.load %arg14[%c0_40, %c0_41, %c0_42] : memref<1x1x64xf32, #tpu.memory_space<vmem>>, vector<1x1x64xf32>
    %119 = vector.shape_cast %118 : vector<1x1x64xf32> to vector<1x64xf32>
    %120 = vector.broadcast %119 : vector<1x64xf32> to vector<8x64xf32>
    %121 = arith.addf %117, %120 : vector<8x64xf32>
    %cst_43 = arith.constant 0.000000e+00 : f32
    %122 = vector.broadcast %cst_43 : f32 to vector<8x64xf32>
    %123 = arith.maximumf %121, %122 : vector<8x64xf32>
    %124 = arith.truncf %123 : vector<8x64xf32> to vector<8x64xbf16>
    %c0_44 = arith.constant 0 : index
    %c0_45 = arith.constant 0 : index
    %c0_46 = arith.constant 0 : index
    %125 = vector.load %arg15[%c0_44, %c0_45, %c0_46] : memref<1x64x32xbf16, #tpu.memory_space<vmem>>, vector<1x64x32xbf16>
    %126 = vector.shape_cast %125 : vector<1x64x32xbf16> to vector<64x32xbf16>
    %cst_47 = arith.constant dense<0.000000e+00> : vector<8x32xf32>
    %127 = tpu.matmul %124, %126, %cst_47 {dimension_numbers = #tpu.dot_dimension_numbers<[1], [0], [0], [1], [0, 0, 1, 1], [], []>} : vector<8x64xbf16>, vector<64x32xbf16>, vector<8x32xf32> -> vector<8x32xf32>
    %c0_48 = arith.constant 0 : index
    %c0_49 = arith.constant 0 : index
    %c0_50 = arith.constant 0 : index
    %128 = vector.load %arg16[%c0_48, %c0_49, %c0_50] : memref<1x1x32xf32, #tpu.memory_space<vmem>>, vector<1x1x32xf32>
    %129 = vector.shape_cast %128 : vector<1x1x32xf32> to vector<1x32xf32>
    %130 = vector.broadcast %129 : vector<1x32xf32> to vector<8x32xf32>
    %131 = arith.addf %127, %130 : vector<8x32xf32>
    %132 = arith.addf %113, %131 : vector<8x32xf32>
    %c0_51 = arith.constant 0 : index
    %c0_52 = arith.constant 0 : index
    %c0_53 = arith.constant 0 : index
    %133 = vector.load %arg17[%c0_51, %c0_52, %c0_53] : memref<1x1x32xf32, #tpu.memory_space<vmem>>, vector<1x1x32xf32>
    %134 = vector.shape_cast %133 : vector<1x1x32xf32> to vector<1x32xf32>
    %c0_54 = arith.constant 0 : index
    %c0_55 = arith.constant 0 : index
    %c0_56 = arith.constant 0 : index
    %135 = vector.load %arg18[%c0_54, %c0_55, %c0_56] : memref<1x1x32xf32, #tpu.memory_space<vmem>>, vector<1x1x32xf32>
    %136 = vector.shape_cast %135 : vector<1x1x32xf32> to vector<1x32xf32>
    %cst_57 = arith.constant dense<0.000000e+00> : vector<8xf32>
    %137 = vector.multi_reduction <add>, %132, %cst_57 [1] : vector<8x32xf32> to vector<8xf32>
    %138 = vector.shape_cast %137 : vector<8xf32> to vector<8x1xf32>
    %cst_58 = arith.constant 3.200000e+01 : f32
    %139 = vector.broadcast %cst_58 : f32 to vector<8x1xf32>
    %140 = arith.divf %138, %139 : vector<8x1xf32>
    %141 = vector.broadcast %140 : vector<8x1xf32> to vector<8x32xf32>
    %142 = arith.subf %132, %141 : vector<8x32xf32>
    %143 = arith.mulf %142, %142 : vector<8x32xf32>
    %cst_59 = arith.constant dense<0.000000e+00> : vector<8xf32>
    %144 = vector.multi_reduction <add>, %143, %cst_59 [1] : vector<8x32xf32> to vector<8xf32>
    %145 = vector.shape_cast %144 : vector<8xf32> to vector<8x1xf32>
    %cst_60 = arith.constant 3.200000e+01 : f32
    %146 = vector.broadcast %cst_60 : f32 to vector<8x1xf32>
    %147 = arith.divf %145, %146 : vector<8x1xf32>
    %148 = vector.broadcast %140 : vector<8x1xf32> to vector<8x32xf32>
    %149 = arith.subf %132, %148 : vector<8x32xf32>
    %cst_61 = arith.constant 9.99999974E-6 : f32
    %150 = vector.broadcast %cst_61 : f32 to vector<8x1xf32>
    %151 = arith.addf %147, %150 : vector<8x1xf32>
    %152 = math.rsqrt %151 : vector<8x1xf32>
    %153 = vector.broadcast %152 : vector<8x1xf32> to vector<8x32xf32>
    %154 = arith.mulf %149, %153 : vector<8x32xf32>
    %155 = vector.broadcast %134 : vector<1x32xf32> to vector<8x32xf32>
    %156 = arith.mulf %154, %155 : vector<8x32xf32>
    %157 = vector.broadcast %136 : vector<1x32xf32> to vector<8x32xf32>
    %158 = arith.addf %156, %157 : vector<8x32xf32>
    %c0_62 = arith.constant 0 : index
    %c0_63 = arith.constant 0 : index
    %159 = vector.load %arg22[%c0_62, %c0_63] : memref<8x32xf32, #tpu.memory_space<vmem>>, vector<8x32xf32>
    tpu.vector_store %arg22[%c0_62, %c0_63], %158 {strides = array<i32>} : memref<8x32xf32, #tpu.memory_space<vmem>>, vector<8x32xf32>,
    %c1_i32 = arith.constant 1 : i32
    %160 = arith.cmpi eq, %arg1, %c1_i32 : i32
    %161 = arith.extui %160 : i1 to i32
    %c0_i32_64 = arith.constant 0 : i32
    %162 = arith.cmpi ne, %161, %c0_i32_64 : i32
    scf.if %162 {
      %c0_65 = arith.constant 0 : index
      %c0_66 = arith.constant 0 : index
      %163 = vector.load %arg22[%c0_65, %c0_66] : memref<8x32xf32, #tpu.memory_space<vmem>>, vector<8x32xf32>
      %cst_67 = arith.constant dense<0.000000e+00> : vector<32xf32>
      %164 = vector.multi_reduction <add>, %163, %cst_67 [0] : vector<8x32xf32> to vector<32xf32>
      %165 = vector.shape_cast %164 : vector<32xf32> to vector<1x32xf32>
      %cst_68 = arith.constant 8.000000e+00 : f32
      %166 = vector.broadcast %cst_68 : f32 to vector<1x32xf32>
      %167 = arith.divf %165, %166 : vector<1x32xf32>
      %168 = arith.truncf %167 : vector<1x32xf32> to vector<1x32xbf16>
      %c0_69 = arith.constant 0 : index
      %c0_70 = arith.constant 0 : index
      %169 = vector.load %arg19[%c0_69, %c0_70] : memref<32x128xbf16, #tpu.memory_space<vmem>>, vector<32x128xbf16>
      %cst_71 = arith.constant dense<0.000000e+00> : vector<1x128xf32>
      %170 = tpu.matmul %168, %169, %cst_71 {dimension_numbers = #tpu.dot_dimension_numbers<[1], [0], [0], [1], [0, 0, 1, 1], [], []>} : vector<1x32xbf16>, vector<32x128xbf16>, vector<1x128xf32> -> vector<1x128xf32>
      %c0_72 = arith.constant 0 : index
      %c0_73 = arith.constant 0 : index
      %171 = vector.load %arg20[%c0_72, %c0_73] : memref<1x128xf32, #tpu.memory_space<vmem>>, vector<1x128xf32>
      %172 = vector.shape_cast %171 : vector<1x128xf32> to vector<128xf32>
      %173 = vector.shape_cast %172 : vector<128xf32> to vector<1x128xf32>
      %174 = arith.addf %170, %173 : vector<1x128xf32>
      %c0_74 = arith.constant 0 : index
      %c0_75 = arith.constant 0 : index
      %c0_76 = arith.constant 0 : index
      %175 = vector.load %arg21[%c0_74, %c0_75, %c0_76] : memref<1x1x128xf32, #tpu.memory_space<vmem>>, vector<1x1x128xf32>
      %176 = vector.shape_cast %175 : vector<1x1x128xf32> to vector<1x128xf32>
      %177 = vector.shape_cast %174 : vector<1x128xf32> to vector<1x1x128xf32>
      tpu.vector_store %arg21[%c0_74, %c0_75, %c0_76], %177 {strides = array<i32>} : memref<1x1x128xf32, #tpu.memory_space<vmem>>, vector<1x1x128xf32>,
    } else {
    }
    return
  }
  func.func @transform_0(%arg0: i32, %arg1: i32) -> (i32, i32, i32) {
    %c0_i32 = arith.constant 0 : i32
    %c0_i32_0 = arith.constant 0 : i32
    %c0_i32_1 = arith.constant 0 : i32
    return %arg0, %c0_i32, %c0_i32_0 : i32, i32, i32
  }
  func.func @transform_1(%arg0: i32, %arg1: i32) -> (i32, i32) {
    %c0_i32 = arith.constant 0 : i32
    %c0_i32_0 = arith.constant 0 : i32
    %c0_i32_1 = arith.constant 0 : i32
    return %c0_i32, %c0_i32_0 : i32, i32
  }
  func.func @transform_2(%arg0: i32, %arg1: i32) -> (i32, i32) {
    %c0_i32 = arith.constant 0 : i32
    %c0_i32_0 = arith.constant 0 : i32
    %c0_i32_1 = arith.constant 0 : i32
    return %c0_i32, %c0_i32_0 : i32, i32
  }
  func.func @transform_3(%arg0: i32, %arg1: i32) -> (i32, i32) {
    %c0_i32 = arith.constant 0 : i32
    %c0_i32_0 = arith.constant 0 : i32
    %c0_i32_1 = arith.constant 0 : i32
    return %c0_i32, %c0_i32_0 : i32, i32
  }
  func.func @transform_4(%arg0: i32, %arg1: i32) -> (i32, i32) {
    %c0_i32 = arith.constant 0 : i32
    %c0_i32_0 = arith.constant 0 : i32
    %c0_i32_1 = arith.constant 0 : i32
    return %c0_i32, %c0_i32_0 : i32, i32
  }
  func.func @transform_5(%arg0: i32, %arg1: i32) -> (i32, i32, i32, i32) {
    %c0_i32 = arith.constant 0 : i32
    %c0_i32_0 = arith.constant 0 : i32
    %c0_i32_1 = arith.constant 0 : i32
    %c0_i32_2 = arith.constant 0 : i32
    return %arg1, %c0_i32, %c0_i32_0, %c0_i32_1 : i32, i32, i32, i32
  }
  func.func @transform_6(%arg0: i32, %arg1: i32) -> (i32, i32, i32) {
    %c0_i32 = arith.constant 0 : i32
    %c0_i32_0 = arith.constant 0 : i32
    %c0_i32_1 = arith.constant 0 : i32
    return %arg1, %c0_i32, %c0_i32_0 : i32, i32, i32
  }
  func.func @transform_7(%arg0: i32, %arg1: i32) -> (i32, i32, i32, i32) {
    %c0_i32 = arith.constant 0 : i32
    %c0_i32_0 = arith.constant 0 : i32
    %c0_i32_1 = arith.constant 0 : i32
    %c0_i32_2 = arith.constant 0 : i32
    return %arg1, %c0_i32, %c0_i32_0, %c0_i32_1 : i32, i32, i32, i32
  }
  func.func @transform_8(%arg0: i32, %arg1: i32) -> (i32, i32, i32) {
    %c0_i32 = arith.constant 0 : i32
    %c0_i32_0 = arith.constant 0 : i32
    %c0_i32_1 = arith.constant 0 : i32
    return %arg1, %c0_i32, %c0_i32_0 : i32, i32, i32
  }
  func.func @transform_9(%arg0: i32, %arg1: i32) -> (i32, i32, i32) {
    %c0_i32 = arith.constant 0 : i32
    %c0_i32_0 = arith.constant 0 : i32
    %c0_i32_1 = arith.constant 0 : i32
    return %arg1, %c0_i32, %c0_i32_0 : i32, i32, i32
  }
  func.func @transform_10(%arg0: i32, %arg1: i32) -> (i32, i32, i32) {
    %c0_i32 = arith.constant 0 : i32
    %c0_i32_0 = arith.constant 0 : i32
    %c0_i32_1 = arith.constant 0 : i32
    return %arg1, %c0_i32, %c0_i32_0 : i32, i32, i32
  }
  func.func @transform_11(%arg0: i32, %arg1: i32) -> (i32, i32, i32) {
    %c0_i32 = arith.constant 0 : i32
    %c0_i32_0 = arith.constant 0 : i32
    %c0_i32_1 = arith.constant 0 : i32
    return %arg1, %c0_i32, %c0_i32_0 : i32, i32, i32
  }
  func.func @transform_12(%arg0: i32, %arg1: i32) -> (i32, i32, i32) {
    %c0_i32 = arith.constant 0 : i32
    %c0_i32_0 = arith.constant 0 : i32
    %c0_i32_1 = arith.constant 0 : i32
    return %arg1, %c0_i32, %c0_i32_0 : i32, i32, i32
  }
  func.func @transform_13(%arg0: i32, %arg1: i32) -> (i32, i32, i32) {
    %c0_i32 = arith.constant 0 : i32
    %c0_i32_0 = arith.constant 0 : i32
    %c0_i32_1 = arith.constant 0 : i32
    return %arg1, %c0_i32, %c0_i32_0 : i32, i32, i32
  }
  func.func @transform_14(%arg0: i32, %arg1: i32) -> (i32, i32, i32) {
    %c0_i32 = arith.constant 0 : i32
    %c0_i32_0 = arith.constant 0 : i32
    %c0_i32_1 = arith.constant 0 : i32
    return %arg1, %c0_i32, %c0_i32_0 : i32, i32, i32
  }
  func.func @transform_15(%arg0: i32, %arg1: i32) -> (i32, i32, i32) {
    %c0_i32 = arith.constant 0 : i32
    %c0_i32_0 = arith.constant 0 : i32
    %c0_i32_1 = arith.constant 0 : i32
    return %arg1, %c0_i32, %c0_i32_0 : i32, i32, i32
  }
  func.func @transform_16(%arg0: i32, %arg1: i32) -> (i32, i32, i32) {
    %c0_i32 = arith.constant 0 : i32
    %c0_i32_0 = arith.constant 0 : i32
    %c0_i32_1 = arith.constant 0 : i32
    return %arg1, %c0_i32, %c0_i32_0 : i32, i32, i32
  }
  func.func @transform_17(%arg0: i32, %arg1: i32) -> (i32, i32) {
    %c0_i32 = arith.constant 0 : i32
    %c0_i32_0 = arith.constant 0 : i32
    %c0_i32_1 = arith.constant 0 : i32
    return %c0_i32, %c0_i32_0 : i32, i32
  }
  func.func @transform_18(%arg0: i32, %arg1: i32) -> (i32, i32) {
    %c0_i32 = arith.constant 0 : i32
    %c0_i32_0 = arith.constant 0 : i32
    %c0_i32_1 = arith.constant 0 : i32
    return %c0_i32, %c0_i32_0 : i32, i32
  }
  func.func @transform_19(%arg0: i32, %arg1: i32) -> (i32, i32, i32) {
    %c0_i32 = arith.constant 0 : i32
    %c0_i32_0 = arith.constant 0 : i32
    %c0_i32_1 = arith.constant 0 : i32
    return %arg0, %c0_i32, %c0_i32_0 : i32, i32, i32
  }
}

</mosaic_0001>

<bundles_post_ra>
// kernel: tpu_custom_call.1
= control target key start
LH: loop header
LB: loop body
LE: loop exit
PB: predicated region body
PF: predicated region fallthrough
CT: control target
= control target key end

     0   :  { %s4247_s0 = inlined_call_operand.vmem [shape: f32[2,8,16], index: 0, kind: input, shape index: {}]   ;;  %s4248_s1 = inlined_call_operand.hbm [shape: f32[1,16], index: 1, kind: input, shape index: {}]   ;;  %s4249_s2 = inlined_call_operand.hbm [shape: f32[1,16], index: 2, kind: input, shape index: {}]   ;;  %s4250_s3 = inlined_call_operand.hbm [shape: bf16[16,32], index: 3, kind: input, shape index: {}]   ;;  %s4251_s4 = inlined_call_operand.hbm [shape: f32[1,32], index: 4, kind: input, shape index: {}]   ;;  %s4252_s5 = inlined_call_operand.vmem [shape: bf16[2,3,32,32], index: 5, kind: input, shape index: {}]   ;;  %s4253_s6 = inlined_call_operand.vmem [shape: f32[2,3,32], index: 6, kind: input, shape index: {}]   ;;  %s4254_s7 = inlined_call_operand.hbm [shape: bf16[2,4,8,32], index: 7, kind: input, shape index: {}]   ;;  %s4255_s8 = inlined_call_operand.vmem [shape: f32[2,1,32], index: 8, kind: input, shape index: {}]   ;;  %s4256_s9 = inlined_call_operand.hbm [shape: f32[2,1,32], index: 9, kind: input, shape index: {}]   ;;  %s4257_s10 = inlined_call_operand.hbm [shape: f32[2,1,32], index: 10, kind: input, shape index: {}]   ;;  %s4258_s11 = inlined_call_operand.hbm [shape: bf16[2,32,64], index: 11, kind: input, shape index: {}]   ;;  %s4259_s12 = inlined_call_operand.hbm [shape: f32[2,1,64], index: 12, kind: input, shape index: {}]   ;;  %s4260_s13 = inlined_call_operand.vmem [shape: bf16[2,64,32], index: 13, kind: input, shape index: {}]   ;;  %s4261_s14 = inlined_call_operand.hbm [shape: f32[2,1,32], index: 14, kind: input, shape index: {}]   ;;  %s4262_s15 = inlined_call_operand.vmem [shape: f32[2,1,32], index: 15, kind: input, shape index: {}]   ;;  %s4263_s16 = inlined_call_operand.vmem [shape: f32[2,1,32], index: 16, kind: input, shape index: {}]   ;;  %s4264_s17 = inlined_call_operand.vmem [shape: bf16[32,128], index: 17, kind: input, shape index: {}]   ;;  %s4265_s18 = inlined_call_operand.vmem [shape: f32[1,128], index: 18, kind: input, shape index: {}]   ;;  %s4266_s19 = inlined_call_operand.hbm [shape: f32[2,1,128], index: 19, kind: output, shape index: {}]  }
   0x1   :  { %4312 = sst [smem:[#allocation40_spill]] %s4247_s0 }
   0x2   :  { %4313 = sst [smem:[#allocation41_spill]] %s4248_s1 }
   0x3   :  { %4314 = sst [smem:[#allocation42_spill]] %s4249_s2 }
   0x4   :  { %4315 = sst [smem:[#allocation43_spill]] %s4250_s3 }
   0x5   :  { %4316 = sst [smem:[#allocation44_spill]] %s4251_s4 }
   0x6   :  { %4317 = sst [smem:[#allocation45_spill]] %s4252_s5 }
   0x7   :  { %4318 = sst [smem:[#allocation46_spill]] %s4253_s6 }
   0x8   :  { %4319 = sst [smem:[#allocation47_spill]] %s4254_s7 }
   0x9   :  { %4320 = sst [smem:[#allocation48_spill]] %s4255_s8 }
   0xa   :  { %4321 = sst [smem:[#allocation49_spill]] %s4256_s9 }
   0xb   :  { %4322 = sst [smem:[#allocation50_spill]] %s4257_s10 }
   0xc   :  { %4323 = sst [smem:[#allocation51_spill]] %s4258_s11 }
   0xd   :  { %4324 = sst [smem:[#allocation52_spill]] %s4259_s12 }
   0xe   :  { %4325 = sst [smem:[#allocation53_spill]] %s4260_s13 }
   0xf   :  { %4326 = sst [smem:[#allocation54_spill]] %s4261_s14 }
  0x10   :  { %4327 = sst [smem:[#allocation55_spill]] %s4262_s15 }
  0x11   :  { %4328 = sst [smem:[#allocation56_spill]] %s4263_s16 }
  0x12   :  { %4329 = sst [smem:[#allocation57_spill]] %s4264_s17 }
  0x13   :  { %4330 = sst [smem:[#allocation58_spill]] %s4265_s18 }
  0x14   :  { %4331 = sst [smem:[#allocation59_spill]] %s4266_s19 }
  0x15   :  { %24 = vsyncpa [#allocation4], 0 }
  0x16   :  { %25 = vsyncpa [#allocation7], 0 }
  0x17   :  { %26 = vsyncpa [#allocation10], 0 }
  0x18   :  { %27 = vsyncpa [#allocation5], 0 }
  0x19   :  { %29 = vsyncpa [#allocation5 + $0x1], 0  ;;  %s3521_s0 = smov 0   ;;  %s3523_s30 = smov 0  }
  0x1a   :  { %s3525_s20 = smov 0   ;;  %s3527_s21 = smov 0  }
  0x1b   :  { %s3529_s1 = smov 0   ;;  %s3531_s22 = smov 0  }
  0x1c   :  { %s3533_s2 = smov 0   ;;  %s3535_s23 = smov 0  }
  0x1d   :  { %s3537_s24 = smov 0   ;;  %s3539_s25 = smov 0  }
  0x1e   :  { %s3541_s3 = smov 0  }
  0x1f LB: > { %4332 = sst [smem:[#allocation23_spill]] %s3357_s0  ;;  %s3575_s26 = sadd.s32 4294967295, %s3397_s3   ;;  %s3397_s3 = sphi %s3541_s3, %s35_s3   ;;  %s3393_s25 = sphi %s3539_s25, %s4431_s25   ;;  %s3389_s24 = sphi %s3537_s24, %s4433_s24   ;;  %s3385_s23 = sphi %s3535_s23, %s4429_s23   ;;  %s3381_s2 = sphi %s3533_s2, %s4432_s2   ;;  %s3377_s22 = sphi %s3531_s22, %s4428_s22   ;;  %s3373_s1 = sphi %s3529_s1, %s4427_s1   ;;  %s3369_s21 = sphi %s3527_s21, %s4426_s21   ;;  %s3365_s20 = sphi %s3525_s20, %s4425_s20   ;;  %s3361_s30 = sphi %s3523_s30, %s4424_s30   ;;  %s3357_s0 = sphi %s3521_s0, %s4423_s0  }
  0x20   : > { %4333 = sst [smem:[#allocation24_spill]] %s3361_s30  ;;  %s2497_s27 = sadd.s32 4294967294, %s3397_s3  }
  0x21   : > { %4334 = sst [smem:[#allocation25_spill]] %s3365_s20  ;;  %p223_p0 = scmp.ne.s32.totalorder %s3377_s22, %s3373_s1 }
  0x22   : > { %4335 = sst [smem:[#allocation26_spill]] %s3373_s1  ;;  %p224_p1 = scmp.eq.s32.totalorder %s3397_s3, 0 }
  0x23   : > { %4336 = sst [smem:[#allocation27_spill]] %s3377_s22  ;;  %p229_p2 = scmp.ne.s32.totalorder %s3373_s1, %s3369_s21 }
  0x24   : > { %4337 = sst [smem:[#allocation28_spill]] %s3381_s2  ;;  %p4278_p3 = scmp.eq.s32.totalorder %s3575_s26, 0 }
  0x25   : > { %4338 = sst [smem:[#allocation29_spill]] %s3385_s23  ;;  %p3583_p4 = por %p224_p1, %p223_p0 }
  0x26   : > { %4339 = sst [smem:[#allocation30_spill]] %s3393_s25  ;;  %p3590_p5 = por %p4278_p3, %p229_p2 }
  0x27   : > { %4340 = sst [smem:[#allocation31_spill]] %s3397_s3  ;;  %p528_p6 = scmp.ne.s32.totalorder %s3365_s20, %s3361_s30 }
  0x28   : > { %4341 = sst [smem:[#allocation32_spill]] %s3575_s26  ;;  %p529_p7 = scmp.eq.s32.totalorder %s3575_s26, 3 }
  0x29   : > { %s4342_s28 = scalar_select %p3583_p4, 1, 0 }
  0x2a   : > { %s4343_s19 = scalar_select %p3590_p5, 1, 0 }
  0x2b   : > { %p534_p8 = scmp.ne.s32.totalorder %s3361_s30, %s3357_s0  ;;  %p535_p9 = scmp.eq.s32.totalorder %s2497_s27, 3 }
  0x2c   : > { %4344 = sst [smem:[#allocation33_spill]] %s4343_s19  ;;  %p2498_p10 = scmp.ge.s32.totalorder %s3397_s3, 1 }
  0x2d   : > { %p3600_p11 = por %p529_p7, %p528_p6  ;;  %p542_p12 = scmp.lt.s32.totalorder %s3397_s3, 5 }
  0x2e   : > { %p3605_p13 = por %p535_p9, %p534_p8  ;;  %s3399_s17 = smov [#allocation3]  }
  0x2f   : > { %s4345_s21 = scalar_select %p3600_p11, 1, 0 }
  0x30   : > { %s4347_s18 = scalar_select %p3605_p13, 1, 0 }
  0x31   : > { %4346 = sst [smem:[#allocation34_spill]] %s4345_s21  ;;  %p3609_p0 = pnand %p2498_p10, %p542_p12 }
  0x32   : > { %4348 = sst [smem:[#allocation35_spill]] %s4347_s18  ;;  %s555_s16 = sshll.u32 %s3399_s17, 4  ;;  %s556_s16 = int_to_ptr.vmem [resolvable:$true] %s555_s16 }
  0x33   : > { %s4349_s29 = scalar_select %p3609_p0, 1, 0 }
  0x34   : > { %p2785_p1 = pneg %p3609_p0  ;;  %s47_s0 = sadd.s32 1, %s3393_s25 }
  0x35   : > { %s44_s21 = sadd.s32 1, %s3389_s24  ;;  %s4351_s15 = sld [smem:[#allocation41_spill]] }
  0x36   : > { %p3617_p2 = pnand %p2785_p1, %p4278_p3 }
  0x38   : > { %s4350_s27 = scalar_select %p3617_p2, 1, 0 }
  0x39   : > { %p3631_p7 = pneg %p3617_p2 }
  0x3b   : > { %s2971_s6 = scalar_lea.hbm %s4351_s15, 16 }
  0x3c   : > { %p2972_p6 = scmp.ne.s32.totalorder %s4351_s15, %s2971_s6  ;;  %p2978_p10 = scmp.lt.u32.totalorder %s2971_s6, %s4351_s15 }
  0x3d   : > { %s4352_s17 = scalar_select %p3631_p7, 1, 0 }
  0x3e   : > { %p2974_p8 = pnand %p3631_p7, %p2972_p6 }
  0x40   : > { %p2975_p9 = pneg %p2974_p8 }
  0x42   : > { %p2980_p12 = pnand %p2978_p10, %p2975_p9 }
  0x44   : > { %2983 = shalt.err (!%p2980_p12)
}
  0x45   : > { %s2984_s13 = scalar_lea.vmem %s556_s16, 16  ;;  %s2991_s5 = scalar_lea.vmem %s556_s16, 32 }
  0x46   : > { %p2985_p1 = scmp.ne.s32.totalorder %s556_s16, %s2984_s13  ;;  %p2992_p11 = scmp.lt.s32.totalorder %s556_s16, %s556_s16 }
  0x47   : > { %p2993_p5 = scmp.lt.s32.totalorder %s2991_s5, %s2984_s13 }
  0x48   : > { %p2987_p3 = pnand %p2985_p1, %p3631_p7 }
  0x49   : > { %p2994_p0 = por %p2993_p5, %p2992_p11 }
  0x4a   : > { %p2988_p13 = pneg %p2987_p3 }
  0x4c   : > { %p2995_p4 = pnand %p2994_p0, %p2988_p13 }
  0x4e   : > { %2998 = shalt.err (!%p2995_p4)
}
  0x4f   : > { %2788 = dma.hbm_to_vmem [thread:$0]  (!%p3617_p2), %s4351_s15, 16, %s556_s16, [#allocation4]  }
  0x50   : > { %p45_p3 = scmp.ge.s32.totalorder %s44_s21, 2  ;;  %s216_s6 = sadd.s32 1, %s3377_s22 }
  0x51   : > { %p2825_p4 = scmp.lt.s32.totalorder %s3397_s3, 4  ;;  %s629_s23 = sand.u32 1, %s3397_s3  }
  0x52   : > { %s4435_s21 = smov (%p45_p3, %s44_s21), 0  ;;  %s4437_s0 = smov (!%p45_p3, %s47_s0), %s3393_s25 }
  0x53   : > { %4353 = sst [smem:[#allocation36_spill]] %s4435_s21  ;;  %s213_s2 = ssub.s32 %s3389_s24, %s4435_s21 }
  0x54   : > { %p49_p5 = scmp.ge.s32.totalorder %s4437_s0, 2  ;;  %p214_p11 = scmp.eq.s32.totalorder %s213_s2, 0 }
  0x55   : > { %s3656_s13 = sand.u32 1, %s3377_s22   ;;  %s4289_s18 = sshll.u32 %s3389_s24, 8 }
  0x56   : > { %s4439_s0 = smov (%p49_p5, %s4437_s0), 0  ;;  %s4290_s8 = sshll.u32 %s3656_s13, 4 }
  0x57   : > { %4354 = sst [smem:[#allocation37_spill]] %s4439_s0  ;;  %s515_s5 = ssub.s32 %s3393_s25, %s4439_s0 }
  0x58   : > { %s3661_s16 = scalar_select %p214_p11, %s3377_s22, %s216_s6  }
  0x59   : > { %p516_p13 = scmp.eq.s32.totalorder %s515_s5, 0  ;;  %s4356_s15 = sadd.s32 1, %s3365_s20 }
  0x5a   : > { %4355 = sst [smem:[#allocation38_spill]] %s3661_s16  ;;  %s4358_s7 = sld [smem:[#allocation47_spill]] }
  0x5b   : > { %s3670_s21 = scalar_select %p516_p13, %s3365_s20, %s4356_s15  }
  0x5c   : > { %s633_s1 = scalar_lea.vmem [#allocation11], %s4290_s8  ;;  %p4359_p0 = scmp.ne.s32.totalorder %s4342_s28, 0 }
  0x5d   : > { %4357 = sst [smem:[#allocation39_spill]] %s3670_s21  ;;  %s640_s6 = sshll.u32 %s633_s1, 4  ;;  %s3681_s6 = int_to_ptr.vmem [resolvable:$true] %s640_s6 }
  0x5e   : > { %p3687_p6 = pnand %p2825_p4, %p4359_p0  ;;  %s3692_s5 = sshll.u32 %s3389_s24, 4 }
  0x5f   : > { %s4361_s9 = sld [smem:[#allocation49_spill]]  ;;  %s3700_s8 = scalar_lea.sflag [#allocation4], %s629_s23 }
  0x60   : > { %s3677_s19 = scalar_lea.hbm %s4358_s7, %s4289_s18  ;;  %p3706_p9 = pneg %p3687_p6 }
  0x61   : > { %s4360_s15 = scalar_select %p3687_p6, 1, 0 }
  0x62   : > { %s2999_s1 = scalar_lea.hbm %s3677_s19, 256  ;;  %s3004_s16 = scalar_lea.hbm %s4358_s7, 512 }
  0x63   : > { %p3000_p8 = scmp.ne.s32.totalorder %s3677_s19, %s2999_s1  ;;  %p3005_p1 = scmp.lt.u32.totalorder %s3677_s19, %s4358_s7 }
  0x64   : > { %s4362_s28 = scalar_select %p3706_p9, 1, 0 }
  0x65   : > { %s3698_s18 = scalar_lea.hbm %s4361_s9, %s3692_s5  ;;  %p3002_p10 = pnand %p3706_p9, %p3000_p8 }
  0x66   : > { %p3006_p3 = scmp.lt.u32.totalorder %s3004_s16, %s2999_s1  ;;  %p3008_p5 = scmp.lt.u32.totalorder %s2999_s1, %s3677_s19 }
  0x67   : > { %p3003_p12 = pneg %p3002_p10 }
  0x68   : > { %p3007_p4 = por %p3006_p3, %p3005_p1 }
  0x6a   : > { %p3009_p11 = por %p3008_p5, %p3007_p4 }
  0x6c   : > { %p3010_p13 = pnand %p3009_p11, %p3003_p12 }
  0x6e   : > { %3013 = shalt.err (!%p3010_p13)
}
  0x6f   : > { %s3014_s23 = scalar_lea.vmem %s3681_s6, 256  ;;  %s3400_s0 = smov [#allocation11]  }
  0x70   : > { %p3015_p0 = scmp.ne.s32.totalorder %s3681_s6, %s3014_s23  ;;  %s3019_s25 = sshll.u32 %s3400_s0, 4  ;;  %s3020_s25 = int_to_ptr.vmem [resolvable:$false] %s3019_s25 }
  0x71   : > { %s3021_s30 = scalar_lea.vmem %s3020_s25, 512  ;;  %p3022_p2 = scmp.lt.s32.totalorder %s3681_s6, %s3020_s25 }
  0x72   : > { %p3017_p8 = pnand %p3015_p0, %p3706_p9  ;;  %p3023_p7 = scmp.lt.s32.totalorder %s3021_s30, %s3014_s23 }
  0x74   : > { %p3018_p10 = pneg %p3017_p8  ;;  %p3024_p1 = por %p3023_p7, %p3022_p2 }
  0x76   : > { %p3025_p3 = pnand %p3024_p1, %p3018_p10 }
  0x78   : > { %3028 = shalt.err (!%p3025_p3)
}
  0x79   : > { %s4307_s16 = smov 64   ;;  %s4308_s1 = smov 4  }
  0x7a   : > { %2801 = dma.hbm_to_vmem [thread:$0]  (!%p3687_p6), %s3677_s19, 256, %s3681_s6, %s3700_s8, %s4307_s16, %s4307_s16, %s4308_s1  }
  0x7b   : > { %s659_s2 = scalar_lea.vmem [#allocation12], %s3656_s13  ;;  %s4363_s10 = sld [smem:[#allocation50_spill]] }
  0x7c   : > { %s666_s23 = sshll.u32 %s659_s2, 4  ;;  %s3029_s7 = scalar_lea.hbm %s3698_s18, 16  ;;  %s667_s23 = int_to_ptr.vmem [resolvable:$true] %s666_s23 }
  0x7d   : > { %p3030_p2 = scmp.ne.s32.totalorder %s3698_s18, %s3029_s7  ;;  %s3034_s20 = scalar_lea.hbm %s4361_s9, 32 }
  0x7e   : > { %p3035_p4 = scmp.lt.u32.totalorder %s3698_s18, %s4361_s9  ;;  %p3036_p5 = scmp.lt.u32.totalorder %s3034_s20, %s3029_s7 }
  0x7f   : > { %p3032_p7 = pnand %p3030_p2, %p3706_p9  ;;  %p3038_p13 = scmp.lt.u32.totalorder %s3029_s7, %s3698_s18 }
  0x80   : > { %p3037_p11 = por %p3036_p5, %p3035_p4 }
  0x81   : > { %s3738_s30 = scalar_lea.hbm %s4363_s10, %s3692_s5  ;;  %p3033_p12 = pneg %p3032_p7 }
  0x82   : > { %p3039_p0 = por %p3038_p13, %p3037_p11 }
  0x84   : > { %p3040_p8 = pnand %p3039_p0, %p3033_p12 }
  0x86   : > { %3043 = shalt.err (!%p3040_p8)
}
  0x87   : > { %s3044_s19 = scalar_lea.vmem %s667_s23, 16  ;;  %s3403_s6 = smov [#allocation12]  }
  0x88   : > { %p3045_p10 = scmp.ne.s32.totalorder %s667_s23, %s3044_s19  ;;  %s3049_s2 = sshll.u32 %s3403_s6, 4  ;;  %s3050_s2 = int_to_ptr.vmem [resolvable:$false] %s3049_s2 }
  0x89   : > { %s3051_s22 = scalar_lea.vmem %s3050_s2, 32  ;;  %p3052_p2 = scmp.lt.s32.totalorder %s667_s23, %s3050_s2 }
  0x8a   : > { %p3047_p1 = pnand %p3045_p10, %p3706_p9  ;;  %p3053_p7 = scmp.lt.s32.totalorder %s3051_s22, %s3044_s19 }
  0x8c   : > { %p3048_p3 = pneg %p3047_p1  ;;  %p3054_p6 = por %p3053_p7, %p3052_p2 }
  0x8e   : > { %p3055_p4 = pnand %p3054_p6, %p3048_p3 }
  0x90   : > { %3058 = shalt.err (!%p3055_p4)
}
  0x91   : > { %p4364_p5 = scmp.ne.s32.totalorder %s4360_s15, 0  ;;  %s676_s7 = scalar_lea.vmem [#allocation13], %s3656_s13 }
  0x92   : > { %s683_s20 = sshll.u32 %s676_s7, 4  ;;  %s4365_s3 = sshll.u32 %s3389_s24, 8  ;;  %s684_s20 = int_to_ptr.vmem [resolvable:$true] %s683_s20 }
  0x93   : > { %2804 = dma.hbm_to_vmem [thread:$0]  (!%p4364_p5), %s3698_s18, 16, %s667_s23, %s3700_s8  }
  0x94   : > { %s4366_s11 = sld [smem:[#allocation51_spill]]  ;;  %s3059_s25 = scalar_lea.hbm %s3738_s30, 16 }
  0x95   : > { %p3060_p6 = scmp.ne.s32.totalorder %s3738_s30, %s3059_s25  ;;  %s3064_s2 = scalar_lea.hbm %s4363_s10, 32 }
  0x96   : > { %p3065_p13 = scmp.lt.u32.totalorder %s3738_s30, %s4363_s10  ;;  %p3066_p0 = scmp.lt.u32.totalorder %s3064_s2, %s3059_s25 }
  0x97   : > { %p3062_p12 = pnand %p3060_p6, %p3706_p9  ;;  %p3068_p10 = scmp.lt.u32.totalorder %s3059_s25, %s3738_s30 }
  0x98   : > { %p3067_p8 = por %p3066_p0, %p3065_p13 }
  0x99   : > { %p3063_p11 = pneg %p3062_p12 }
  0x9a   : > { %s3764_s0 = scalar_lea.hbm %s4366_s11, %s4365_s3  ;;  %p3069_p1 = por %p3068_p10, %p3067_p8 }
  0x9c   : > { %p3070_p3 = pnand %p3069_p1, %p3063_p11 }
  0x9e   : > { %3073 = shalt.err (!%p3070_p3)
}
  0x9f   : > { %s3074_s23 = scalar_lea.vmem %s684_s20, 16  ;;  %s3404_s7 = smov [#allocation13]  }
  0xa0   : > { %p3075_p2 = scmp.ne.s32.totalorder %s684_s20, %s3074_s23  ;;  %s3079_s3 = sshll.u32 %s3404_s7, 4  ;;  %s3080_s3 = int_to_ptr.vmem [resolvable:$false] %s3079_s3 }
  0xa1   : > { %s3081_s26 = scalar_lea.vmem %s3080_s3, 32  ;;  %p3082_p6 = scmp.lt.s32.totalorder %s684_s20, %s3080_s3 }
  0xa2   : > { %p3077_p7 = pnand %p3075_p2, %p3706_p9  ;;  %p3083_p12 = scmp.lt.s32.totalorder %s3081_s26, %s3074_s23 }
  0xa4   : > { %p3078_p4 = pneg %p3077_p7  ;;  %p3084_p5 = por %p3083_p12, %p3082_p6 }
  0xa6   : > { %p3085_p0 = pnand %p3084_p5, %p3078_p4 }
  0xa8   : > { %3088 = shalt.err (!%p3085_p0)
}
  0xa9   : > { %p4367_p13 = scmp.ne.s32.totalorder %s4360_s15, 0  ;;  %s4368_s21 = sshll.u32 %s3656_s13, 4 }
  0xaa   : > { %s694_s25 = scalar_lea.vmem [#allocation14], %s4368_s21  ;;  %s3405_s6 = smov [#allocation6]  }
  0xab   : > { %2807 = dma.hbm_to_vmem [thread:$0]  (!%p4367_p13), %s3738_s30, 16, %s684_s20, %s3700_s8  }
  0xac   : > { %s701_s19 = sshll.u32 %s694_s25, 4  ;;  %s3788_s2 = sshll.u32 %s3405_s6, 4  ;;  %s3786_s19 = int_to_ptr.vmem [resolvable:$true] %s701_s19  ;;  %s567_s2 = int_to_ptr.vmem [resolvable:$true] %s3788_s2 }
  0xad   : > { %s3089_s22 = scalar_lea.hbm %s3764_s0, 256  ;;  %s3094_s7 = scalar_lea.hbm %s4366_s11, 512 }
  0xae   : > { %p3090_p5 = scmp.ne.s32.totalorder %s3764_s0, %s3089_s22  ;;  %p3095_p10 = scmp.lt.u32.totalorder %s3764_s0, %s4366_s11 }
  0xaf   : > { %p3096_p1 = scmp.lt.u32.totalorder %s3094_s7, %s3089_s22  ;;  %p3098_p2 = scmp.lt.u32.totalorder %s3089_s22, %s3764_s0 }
  0xb0   : > { %p3092_p11 = pnand %p3090_p5, %p3706_p9 }
  0xb1   : > { %p3097_p3 = por %p3096_p1, %p3095_p10 }
  0xb2   : > { %p3093_p8 = pneg %p3092_p11 }
  0xb3   : > { %p3099_p7 = por %p3098_p2, %p3097_p3 }
  0xb5   : > { %p3100_p4 = pnand %p3099_p7, %p3093_p8 }
  0xb7   : > { %3103 = shalt.err (!%p3100_p4)
}
  0xb8   : > { %s3104_s30 = scalar_lea.vmem %s3786_s19, 256  ;;  %s3406_s20 = smov [#allocation14]  }
  0xb9   : > { %p3105_p6 = scmp.ne.s32.totalorder %s3786_s19, %s3104_s30  ;;  %s3109_s21 = sshll.u32 %s3406_s20, 4  ;;  %s3110_s21 = int_to_ptr.vmem [resolvable:$false] %s3109_s21 }
  0xba   : > { %s3111_s25 = scalar_lea.vmem %s3110_s21, 512  ;;  %p3112_p5 = scmp.lt.s32.totalorder %s3786_s19, %s3110_s21 }
  0xbb   : > { %p3107_p12 = pnand %p3105_p6, %p3706_p9  ;;  %p3113_p11 = scmp.lt.s32.totalorder %s3111_s25, %s3104_s30 }
  0xbd   : > { %p3108_p0 = pneg %p3107_p12  ;;  %p3114_p10 = por %p3113_p11, %p3112_p5 }
  0xbf   : > { %p3115_p1 = pnand %p3114_p10, %p3108_p0 }
  0xc1   : > { %3118 = shalt.err (!%p3115_p1)
}
  0xc2   : > { %2810 = dma.hbm_to_vmem [thread:$0]  (!%p4367_p13), %s3764_s0, 256, %s3786_s19, %s3700_s8, %s4307_s16, %s4307_s16, %s4308_s1  }
  0xc3   : > { %s4369_s18 = sld [smem:[#allocation42_spill]]  ;;  %p4370_p3 = scmp.ne.s32.totalorder %s4352_s17, 0 }
  0xc9   : > { %s3119_s23 = scalar_lea.hbm %s4369_s18, 16 }
  0xca   : > { %p3120_p8 = scmp.ne.s32.totalorder %s4369_s18, %s3119_s23  ;;  %p3126_p4 = scmp.lt.u32.totalorder %s3119_s23, %s4369_s18 }
  0xcc   : > { %p3122_p2 = pnand %p3120_p8, %p4370_p3 }
  0xce   : > { %p3123_p7 = pneg %p3122_p2 }
  0xd0   : > { %p3128_p6 = pnand %p3126_p4, %p3123_p7 }
  0xd2   : > { %3131 = shalt.err (!%p3128_p6)
}
  0xd3   : > { %s3132_s20 = scalar_lea.vmem %s567_s2, 16  ;;  %s3139_s0 = scalar_lea.vmem %s567_s2, 32 }
  0xd4   : > { %p3133_p12 = scmp.ne.s32.totalorder %s567_s2, %s3132_s20  ;;  %p3140_p11 = scmp.lt.s32.totalorder %s567_s2, %s567_s2 }
  0xd5   : > { %p3141_p10 = scmp.lt.s32.totalorder %s3139_s0, %s3132_s20 }
  0xd6   : > { %p3135_p0 = pnand %p3133_p12, %p4370_p3 }
  0xd7   : > { %p3142_p1 = por %p3141_p10, %p3140_p11 }
  0xd8   : > { %p3136_p5 = pneg %p3135_p0 }
  0xda   : > { %p3143_p13 = pnand %p3142_p1, %p3136_p5 }
  0xdc   : > { %3146 = shalt.err (!%p3143_p13)
}
  0xdd   : > { %p4371_p8 = scmp.ne.s32.totalorder %s4350_s27, 0  ;;  %s4372_s12 = sld [smem:[#allocation52_spill]] }
  0xde   : > { %s714_s23 = scalar_lea.vmem [#allocation15], %s3656_s13 }
  0xdf   : > { %2791 = dma.hbm_to_vmem [thread:$0]  (!%p4371_p8), %s4369_s18, 16, %s567_s2, [#allocation7]  }
  0xe0   : > { %s721_s7 = sshll.u32 %s714_s23, 4  ;;  %s722_s7 = int_to_ptr.vmem [resolvable:$true] %s721_s7 }
  0xe3   : > { %s3838_s22 = scalar_lea.hbm %s4372_s12, %s3692_s5  ;;  %s3152_s2 = scalar_lea.hbm %s4372_s12, 32 }
  0xe4   : > { %s3147_s3 = scalar_lea.hbm %s3838_s22, 16  ;;  %p3153_p4 = scmp.lt.u32.totalorder %s3838_s22, %s4372_s12 }
  0xe5   : > { %p3148_p13 = scmp.ne.s32.totalorder %s3838_s22, %s3147_s3  ;;  %p3154_p6 = scmp.lt.u32.totalorder %s3152_s2, %s3147_s3 }
  0xe6   : > { %p3156_p0 = scmp.lt.u32.totalorder %s3147_s3, %s3838_s22 }
  0xe7   : > { %p3150_p2 = pnand %p3148_p13, %p3706_p9  ;;  %p3155_p12 = por %p3154_p6, %p3153_p4 }
  0xe9   : > { %p3151_p7 = pneg %p3150_p2  ;;  %p3157_p5 = por %p3156_p0, %p3155_p12 }
  0xeb   : > { %p3158_p11 = pnand %p3157_p5, %p3151_p7 }
  0xed   : > { %3161 = shalt.err (!%p3158_p11)
}
  0xee   : > { %s3162_s19 = scalar_lea.vmem %s722_s7, 16  ;;  %s3407_s21 = smov [#allocation15]  }
  0xef   : > { %p3163_p10 = scmp.ne.s32.totalorder %s722_s7, %s3162_s19  ;;  %s3167_s25 = sshll.u32 %s3407_s21, 4  ;;  %s3168_s25 = int_to_ptr.vmem [resolvable:$false] %s3167_s25 }
  0xf0   : > { %s3169_s6 = scalar_lea.vmem %s3168_s25, 32  ;;  %p3170_p2 = scmp.lt.s32.totalorder %s722_s7, %s3168_s25 }
  0xf1   : > { %p3165_p1 = pnand %p3163_p10, %p3706_p9  ;;  %p3171_p8 = scmp.lt.s32.totalorder %s3169_s6, %s3162_s19 }
  0xf3   : > { %p3166_p13 = pneg %p3165_p1  ;;  %p3172_p3 = por %p3171_p8, %p3170_p2 }
  0xf5   : > { %p3173_p4 = pnand %p3172_p3, %p3166_p13 }
  0xf7   : > { %3176 = shalt.err (!%p3173_p4)
}
  0xf8   : > { %p4373_p6 = scmp.ne.s32.totalorder %s4360_s15, 0  ;;  %s3408_s23 = smov [#allocation8]  }
  0xf9   : > { %s576_s3 = sshll.u32 %s3408_s23, 4  ;;  %s3409_s26 = smov [#allocation9]   ;;  %s577_s3 = int_to_ptr.vmem [resolvable:$true] %s576_s3 }
  0xfa   : > { %2813 = dma.hbm_to_vmem [thread:$0]  (!%p4373_p6), %s3838_s22, 16, %s722_s7, %s3700_s8  }
  0xfb   : > { %s590_s30 = sshll.u32 %s3409_s26, 4  ;;  %s4374_s0 = sld [smem:[#allocation43_spill]]  ;;  %s591_s30 = int_to_ptr.vmem [resolvable:$true] %s590_s30 }
  0xfc   : > { %p4376_p8 = scmp.ne.s32.totalorder %s4352_s17, 0 }
 0x101   : > { %s4375_s16 = smov %s4374_s0  ;;  %s3177_s21 = scalar_lea.hbm %s4374_s0, 128 }
 0x102   : > { %p3178_p3 = scmp.ne.s32.totalorder %s4375_s16, %s3177_s21  ;;  %p3184_p0 = scmp.lt.u32.totalorder %s3177_s21, %s4375_s16 }
 0x104   : > { %p3180_p7 = pnand %p3178_p3, %p4376_p8 }
 0x106   : > { %p3181_p12 = pneg %p3180_p7 }
 0x108   : > { %p3186_p5 = pnand %p3184_p0, %p3181_p12 }
 0x10a   : > { %3189 = shalt.err (!%p3186_p5)
}
 0x10b   : > { %s3190_s22 = scalar_lea.vmem %s577_s3, 128  ;;  %p3198_p13 = scmp.lt.s32.totalorder %s577_s3, %s577_s3 }
 0x10c   : > { %p3191_p11 = scmp.ne.s32.totalorder %s577_s3, %s3190_s22  ;;  %p3199_p2 = scmp.lt.s32.totalorder %s3190_s22, %s3190_s22 }
 0x10e   : > { %p3193_p10 = pnand %p3191_p11, %p4376_p8  ;;  %p3200_p4 = por %p3199_p2, %p3198_p13 }
 0x110   : > { %p3194_p1 = pneg %p3193_p10 }
 0x112   : > { %p3201_p6 = pnand %p3200_p4, %p3194_p1 }
 0x114   : > { %3204 = shalt.err (!%p3201_p6)
}
 0x115   : > { %p4377_p3 = scmp.ne.s32.totalorder %s4350_s27, 0  ;;  %s4378_s7 = smov 4  }
 0x116   : > { %s4379_s23 = smov 64   ;;  %s4380_s4 = sld [smem:[#allocation44_spill]] }
 0x117   : > { %2794 = dma.hbm_to_vmem [thread:$0]  (!%p4377_p3), %s4375_s16, 128, %s577_s3, [#allocation7], %s4379_s23, %s4379_s23, %s4378_s7  }
 0x11c   : > { %s3205_s0 = scalar_lea.hbm %s4380_s4, 16 }
 0x11d   : > { %p3206_p7 = scmp.ne.s32.totalorder %s4380_s4, %s3205_s0  ;;  %p3212_p0 = scmp.lt.u32.totalorder %s3205_s0, %s4380_s4 }
 0x11f   : > { %p3208_p6 = pnand %p3206_p7, %p4376_p8 }
 0x121   : > { %p3209_p12 = pneg %p3208_p6 }
 0x123   : > { %p3214_p5 = pnand %p3212_p0, %p3209_p12 }
 0x125   : > { %3217 = shalt.err (!%p3214_p5)
}
 0x126   : > { %s3218_s22 = scalar_lea.vmem %s591_s30, 16  ;;  %s3225_s3 = scalar_lea.vmem %s591_s30, 32 }
 0x127   : > { %p3219_p11 = scmp.ne.s32.totalorder %s591_s30, %s3218_s22  ;;  %p3226_p13 = scmp.lt.s32.totalorder %s591_s30, %s591_s30 }
 0x128   : > { %p3227_p2 = scmp.lt.s32.totalorder %s3225_s3, %s3218_s22 }
 0x129   : > { %p3221_p10 = pnand %p3219_p11, %p4376_p8 }
 0x12a   : > { %p3228_p4 = por %p3227_p2, %p3226_p13 }
 0x12b   : > { %p3222_p1 = pneg %p3221_p10 }
 0x12d   : > { %p3229_p9 = pnand %p3228_p4, %p3222_p1 }
 0x12f   : > { %3232 = shalt.err (!%p3229_p9)
}
 0x130   : > { %2797 = dma.hbm_to_vmem [thread:$0]  (!%p4377_p3), %s4380_s4, 16, %s591_s30, [#allocation10]  }
 0x131   : > { %s4381_s14 = sld [smem:[#allocation54_spill]]  ;;  %s739_s2 = scalar_lea.vmem [#allocation16], %s3656_s13 }
 0x132   : > { %s746_s20 = sshll.u32 %s739_s2, 4  ;;  %p4382_p8 = scmp.ne.s32.totalorder %s4362_s28, 0  ;;  %s747_s20 = int_to_ptr.vmem [resolvable:$true] %s746_s20 }
 0x137   : > { %s3902_s17 = scalar_lea.hbm %s4381_s14, %s3692_s5  ;;  %s3238_s30 = scalar_lea.hbm %s4381_s14, 32 }
 0x138   : > { %s3233_s27 = scalar_lea.hbm %s3902_s17, 16  ;;  %p3239_p3 = scmp.lt.u32.totalorder %s3902_s17, %s4381_s14 }
 0x139   : > { %p3234_p9 = scmp.ne.s32.totalorder %s3902_s17, %s3233_s27  ;;  %p3240_p12 = scmp.lt.u32.totalorder %s3238_s30, %s3233_s27 }
 0x13a   : > { %p3242_p5 = scmp.lt.u32.totalorder %s3233_s27, %s3902_s17 }
 0x13b   : > { %p3236_p7 = pnand %p3234_p9, %p4382_p8  ;;  %p3241_p0 = por %p3240_p12, %p3239_p3 }
 0x13d   : > { %p3237_p6 = pneg %p3236_p7  ;;  %p3243_p11 = por %p3242_p5, %p3241_p0 }
 0x13f   : > { %p3244_p10 = pnand %p3243_p11, %p3237_p6 }
 0x141   : > { %3247 = shalt.err (!%p3244_p10)
}
 0x142   : > { %s3248_s13 = scalar_lea.vmem %s747_s20, 16  ;;  %s3410_s5 = smov [#allocation16]  }
 0x143   : > { %p3249_p1 = scmp.ne.s32.totalorder %s747_s20, %s3248_s13  ;;  %s3253_s6 = sshll.u32 %s3410_s5, 4  ;;  %s3254_s6 = int_to_ptr.vmem [resolvable:$false] %s3253_s6 }
 0x144   : > { %s3255_s22 = scalar_lea.vmem %s3254_s6, 32  ;;  %p3256_p4 = scmp.lt.s32.totalorder %s747_s20, %s3254_s6 }
 0x145   : > { %p3251_p13 = pnand %p3249_p1, %p4382_p8  ;;  %p3257_p9 = scmp.lt.s32.totalorder %s3255_s22, %s3248_s13 }
 0x147   : > { %p3252_p2 = pneg %p3251_p13  ;;  %p3258_p7 = por %p3257_p9, %p3256_p4 }
 0x149   : > { %p3259_p3 = pnand %p3258_p7, %p3252_p2 }
 0x14b   : > { %3262 = shalt.err (!%p3259_p3)
}
 0x14c   : > { %p4383_p12 = scmp.ne.s32.totalorder %s4360_s15, 0  ;;  %p4384_p6 = scmp.ne.s32.totalorder %s4349_s29, 0 }
 0x14d   : > { %s4385_s28 = sld [smem:[#allocation32_spill]] (!%p4384_p6) }
 0x14e   : > { %2816 = dma.hbm_to_vmem [thread:$0]  (!%p4383_p12), %s3902_s17, 16, %s747_s20, %s3700_s8  }
 0x14f   : > { %767 = sbr.rel (%p4384_p6) target bundleno = 3560 (0xde8), region = 96 }
 0x153   : > { %p4386_p8 = scmp.eq.s32.totalorder (!%p4384_p6), %s4385_s28, 0 }
 0x156   : > { %3336 = dma.done.wait (%p4386_p8), [#allocation4], 16   ;;  %p4387_p0 = pmov %p4386_p8 }
 0x158   : > { %3338 = vsyncadd (%p4387_p0), [#allocation4], 4294967280  ;;  %p4388_p5 = pmov %p4387_p0 }
 0x159   : > { %p4389_p11 = pmov %p4387_p0 }
 0x15a   : > { %3340 = dma.done.wait (%p4388_p5), [#allocation7], 144  }
 0x15b   : > { %3342 = vsyncadd (%p4389_p11), [#allocation7], 4294967152  ;;  %p4390_p10 = pmov %p4387_p0 }
 0x15c   : > { %p4391_p1 = pmov %p4387_p0 }
 0x15d   : > { %3344 = dma.done.wait (%p4390_p10), [#allocation10], 16  }
 0x15e   : > { %3346 = vsyncadd (%p4391_p1), [#allocation10], 4294967280  ;;  %s4392_s29 = sld [smem:[#allocation26_spill]]  ;;  %s4393_s8 = sld [smem:[#allocation33_spill]] }
 0x15f   : > { %s785_s15 = sand.u32 1, %s4385_s28  }
 0x160   : > { %s786_s23 = scalar_lea.sflag [#allocation4], %s785_s15 }
 0x164   : > { %s3939_s3 = sand.u32 1, %s4392_s29   ;;  %p4394_p13 = scmp.ne.s32.totalorder %s4393_s8, 0 }
 0x165   : > { %s2519_s7 = sshll.u32 %s3939_s3, 4 }
 0x166   : > { %s3942_s1 = scalar_lea.vmem [#allocation11], %s2519_s7 }
 0x167   : > { %3348 = dma.done.wait (%p4394_p13), %s786_s23, 576  }
 0x168   : > { %3350 = vsyncadd (%p4394_p13), %s786_s23, 4294966720  ;;  %s4395_s26 = sld [smem:[#allocation24_spill]]  ;;  %s4396_s17 = sld [smem:[#allocation29_spill]] }
 0x169   : > { %s4397_s2 = sld [smem:[#allocation28_spill]]  ;;  %s4398_s25 = sld [smem:[#allocation40_spill]] }
 0x16a   : > { %s4400_s23 = sld [smem:[#allocation45_spill]]  ;;  %s4401_s10 = sld [smem:[#allocation46_spill]] }
 0x16b   : > { %s4403_s16 = sld [smem:[#allocation53_spill]]  ;;  %s4404_s8 = sld [smem:[#allocation56_spill]] }
 0x16c   : > { %s797_s15 = scalar_lea.vmem [#allocation12], %s3939_s3  ;;  %s3990_s29 = scalar_lea.vmem [#allocation14], %s2519_s7 }
 0x16d   : > { %s822_s4 = scalar_lea.vmem [#allocation15], %s3939_s3  ;;  %s830_s9 = scalar_lea.vmem [#allocation16], %s3939_s3 }
 0x16e   : > { %p932_p2 = scmp.lt.s32.totalorder %s4396_s17, 1 }
 0x16f   : > { %p936_p4 = scmp.lt.s32.totalorder %s4397_s2, 1  ;;  %p2526_p9 = scmp.ne.s32.totalorder %s4397_s2, 0 }
 0x170   : > { %s4441_s17 = smov (!%p932_p2, %s4396_s17), 1  ;;  %vm967_vm0 = vcmask (!%p2526_p9), 130048   ;;  %v2934_v7 = vld [vmem:[#allocation8] sm:$0xff] (!%p2526_p9)   ;;  %v3411_v8 = vmov (!%p2526_p9), 0.0   ;;  %vm3412_vm1 = vmmov (!%p2526_p9), 0   ;;  %vm1055_vm2 = vcmask (!%p2526_p9), 261120  }
 0x171   : > { %s3953_s27 = scalar_select %p936_p4, %s4397_s2, 1 }
 0x172   : > { %s2521_s0 = sshll.u32 %s4441_s17, 3  ;;  %2624 = vmatprep.subr.bf16.mxu0 (!%p2526_p9), %v3411_v8  ;;  %2626 = vmatprep.mubr.msk.bf16.mxu0 (!%p2526_p9), %vm3412_vm1, %v3411_v8  ;;  %v2527_v13 = vld [vmem:[#allocation3] ss:$0 sm:$0xff] (!%p2526_p9)  ;;  %v2528_v15 = vld [vmem:[#allocation6] ss:$0 sm:$0xff] (!%p2526_p9) }
 0x173   : > { %s935_s19 = scalar_lea.vmem %s4398_s25, %s2521_s0  ;;  %s2754_s13 = smul.u32 48, %s3953_s27  ;;  %2625 = vmatpush3.bf16.msra.mxu0 (!%p2526_p9), %v2934_v7  ;;  %v2529_v19 = vld [vmem:[#allocation9] ss:$0 sm:$0xff] (!%p2526_p9) }
 0x174   : > { %s2523_s5 = sshll.u32 %s3953_s27, 2  ;;  %s2577_s11 = sshll.u32 %s3953_s27, 5  ;;  %v964_v0 = vld [vmem:[%s935_s19] sm:$0xff] (!%p2526_p9) }
 0x175   : > { %s3967_s20 = scalar_lea.vmem %s4400_s23, %s2754_s13  ;;  %s3972_s17 = scalar_lea.vmem %s4401_s10, %s2523_s5  ;;  %v968_v1 = vsel (!%p2526_p9), %vm967_vm0, %v964_v0, 0.0 }
 0x176   : > { %s4402_s0 = sld [smem:[#allocation55_spill]]  ;;  %s3982_s6 = scalar_lea.vmem %s4403_s16, %s2577_s11  ;;  %969 = vadd.xlane.f32.xlu0 (!%p2526_p9), %v968_v1 }
 0x177   : > { %s958_s13 = scalar_lea.vmem %s4404_s8, %s3953_s27  ;;  %s805_s23 = scalar_lea.vmem [#allocation13], %s3939_s3 }
 0x178   : > { %s4405_s10 = sand.u32 1, %s4395_s26   ;;  %963 = sbr.rel (%p2526_p9) target bundleno = 903 (0x387), region = 140 }
 0x179   : > { %s3996_s5 = scalar_lea.vmem [#allocation17], %s4405_s10 }
 0x17c   : > { %s955_s25 = scalar_lea.vmem %s4402_s0, %s3953_s27 }
 0x203   : > { %v970_v2 = vpop.xlane.xlu0 %969 }
 0x204   : > { %v972_v3 = vmul.f32 0.0625, %v970_v2 }
 0x206   : > { %v973_v4 = vsub.f32 %v964_v0, %v972_v3 }
 0x208   : > { %v974_v5 = vmul.f32 %v973_v4, %v973_v4 }
 0x20a   : > { %v975_v6 = vsel %vm967_vm0, %v974_v5, 0.0 }
 0x20b   : > { %976 = vadd.xlane.f32.xlu0 %v975_v6 }
 0x298   : > { %v977_v9 = vpop.xlane.xlu0 %976 }
 0x299   : > { %v978_v10 = vmul.f32 0.0625, %v977_v9 }
 0x29b   : > { %v979_v11 = vadd.f32 1e-05, %v978_v10 }
 0x29d   : > { %2935 = vrsqrt.f32 %v979_v11 }
 0x2a7   : > { %v2936_v12 = vpop.eup %2935 }
 0x2a8   : > { %v981_v14 = vmul.f32 %v2936_v12, %v973_v4 }
 0x2aa   : > { %v988_v16 = vmul.f32 %v2527_v13, %v981_v14 }
 0x2ac   : > { %v995_v17 = vadd.f32 %v2528_v15, %v988_v16 }
 0x2ae   : > { %v996_v18 = vpack.c.bf16 %v995_v17, %v995_v17 }
 0x2b0   : > { %2627 = vmatmul.mubr.msk.bf16.vlgmr.msra.gmra.mrb[0].mxu0 %vm967_vm0, %v996_v18 }
 0x383   : > { %v1049_v20 = vpop.f32.mrb[0].mxu0 }
 0x384   : > { %v1050_v21 = vadd.f32 %v2529_v19, %v1049_v20  ;;  %v2628_v22 = vpop.f32.mrb[1].mxu0 }
 0x385   : > { %v1052_v23 = vpop.f32.mrb[2].mxu0 }
 0x386   : > { %1056 = vst.msk [vmem:[#allocation2] sm:$0xff] %vm1055_vm2, %v1050_v21  ;;  %v2629_v24 = vpop.f32.mrb[3].mxu0 }
 0x387 PF: > { %v2937_v25 = vld [vmem:[%s3967_s20] sm:$0xff]   ;;  %v3413_v26 = vmov 0.0   ;;  %v2938_v27 = vld [vmem:[%s3967_s20 + $0x8] sm:$0xff]   ;;  %vm3414_vm3 = vmmov 0   ;;  %vm1088_vm4 = vcmask 261120   ;;  %v2939_v30 = vld [vmem:[%s3967_s20 + $0x10] sm:$0xff]   ;;  %v1072_v33 = vlaneseq }
 0x388   : > { %2630 = vmatprep.subr.bf16.mxu1 %v3413_v26  ;;  %2646 = vmatprep.subr.bf16.mxu0 %v3413_v26  ;;  %v2940_v31 = vld [vmem:[%s3967_s20 + $0x18] sm:$0xff]   ;;  %v2941_v32 = vld [vmem:[%s3967_s20 + $0x20] sm:$0xff]   ;;  %v2942_v35 = vld [vmem:[%s3967_s20 + $0x28] sm:$0xff]   ;;  %s3415_s11 = smov 120   ;;  %vm1290_vm5 = vcmask 64512   ;;  %s3416_s12 = smov 104  }
 0x389   : > { %2631 = vmatpush3.bf16.msra.mxu1 %v2937_v25  ;;  %2634 = vmatprep.mubr.msk.bf16.mxu1 %vm3414_vm3, %v3413_v26  ;;  %v4028_v34 = vshrl.u32 %v1072_v33, 7  ;;  %v1071_v37 = vld [vmem:[%s3972_s17] sm:$0x7]  ;;  %s3417_s14 = smov 112   ;;  %vm1530_vm6 = vcmask 1043456   ;;  %vm2054_vm7 = vcmask 523264  }
 0x38a   : > { %2632 = vmatprep.subr.bf16.mxu1 %v3413_v26  ;;  %2650 = vmatprep.mubr.msk.bf16.mxu0 %vm3414_vm3, %v3413_v26  ;;  %s4410_s21 = sld [smem:[#allocation28_spill]] }
 0x38b   : > { %2647 = vmatpush3.bf16.msra.mxu0 %v2941_v32  ;;  %v1074_v36 = vsub.s32 0, %v4028_v34  ;;  %v1134_v42 = vsub.s32 1, %v4028_v34  ;;  %v1190_v5 = vsub.s32 2, %v4028_v34 }
 0x38c   : > { %2648 = vmatprep.subr.bf16.mxu0 %v3413_v26 }
 0x38d   : > { %v4008_v28 = vld [vmem:[#allocation2] sm:$0xff]  ;;  %2633 = vmatpush3.bf16.msra.mxu1 %v2938_v27  ;;  %v1075_v38 = vrot.slane %v1071_v37, %v1074_v36  ;;  %v1135_v45 = vrot.slane %v1071_v37, %v1134_v42  ;;  %v1191_v6 = vrot.slane %v1071_v37, %v1190_v5 }
 0x38e   : > { %v1058_v29 = vpack.c.bf16 %v4008_v28, %v4008_v28  ;;  %2638 = vmatprep.subr.bf16.mxu1 %v3413_v26 }
 0x38f   : > { %2649 = vmatpush3.bf16.msra.mxu0 %v2942_v35 }
 0x390   : > { %2635 = vmatmul.mubr.msk.bf16.vlgmr.msra.gmra.mrb[0].mxu1 %vm1088_vm4, %v1058_v29  ;;  %2660 = vmatprep.subr.bf16.mxu0 %v3413_v26  ;;  %p2568_p7 = scmp.ne.s32.totalorder %s4410_s21, 1 }
 0x391   : > { %2639 = vmatpush3.bf16.msra.mxu1 %v2939_v30  ;;  %2642 = vmatprep.mubr.msk.bf16.mxu1 %vm3414_vm3, %v3413_v26  ;;  %vm3419_vm8 = vmmov (!%p2568_p7), 0   ;;  %s4412_s8 = sld [smem:[#allocation58_spill]] (!%p2568_p7) }
 0x392   : > { %2640 = vmatprep.subr.bf16.mxu1 %v3413_v26  ;;  %2651 = vmatmul.mubr.msk.bf16.vlgmr.msra.gmra.mrb[0].mxu0 %vm1088_vm4, %v1058_v29 }
 0x393   : > { %2662 = vmatprep.mubr.msk.bf16.mxu0 %vm3414_vm3, %v3413_v26 }
 0x395   : > { %2641 = vmatpush3.bf16.msra.mxu1 %v2940_v31 }
 0x396   : > { %2654 = vmatprep.subr.bf16.mxu1 %v3413_v26 }
 0x398   : > { %2643 = vmatmul.mubr.msk.bf16.vlgmr.msra.gmra.mrb[4].mxu1 %vm1088_vm4, %v1058_v29 }
 0x399   : > { %2656 = vmatprep.mubr.msk.bf16.mxu1 %vm3414_vm3, %v3413_v26 }
 0x463   : > { %v1126_v39 = vpop.f32.mrb[0].mxu1 }
 0x464   : > { %v1127_v40 = vadd.f32 %v1126_v39, %v1075_v38  ;;  %v2636_v41 = vpop.f32.mrb[1].mxu1 }
 0x465   : > { %v1129_v43 = vpop.f32.mrb[2].mxu1  ;;  %v1238_v7 = vpop.f32.mrb[0].mxu0 }
 0x466   : > { %1249 = vrot.lane.b32.xlu1 %v1127_v40, %s3415_s11  ;;  %v2637_v44 = vpop.f32.mrb[3].mxu1  ;;  %v1258_v53 = vpack.c.bf16 %v1127_v40, %v1127_v40  ;;  %v4065_v8 = vadd.f32 %v1238_v7, %v1191_v6  ;;  %v2652_v9 = vpop.f32.mrb[1].mxu0 }
 0x467   : > { %v1241_v10 = vpop.f32.mrb[2].mxu0 }
 0x468   : > { %v2653_v11 = vpop.f32.mrb[3].mxu0  ;;  %v1286_v12 = vpack.c.bf16 %v4065_v8, %v4065_v8 }
 0x46a   : > { %v1532_v13 = vsel %vm1530_vm6, %v1286_v12, 0 }
 0x46b   : > { %v1182_v46 = vpop.f32.mrb[4].mxu1 }
 0x46c   : > { %v1183_v47 = vadd.f32 %v1182_v46, %v1135_v45  ;;  %v2644_v48 = vpop.f32.mrb[5].mxu1 }
 0x46d   : > { %v1185_v49 = vpop.f32.mrb[6].mxu1 }
 0x46e   : > { %1269 = vrot.lane.b32.xlu1 %v1183_v47, %s3416_s12  ;;  %1263 = vrot.lane.b32.xlu0 %v1183_v47, %s3415_s11  ;;  %v2645_v50 = vpop.f32.mrb[7].mxu1  ;;  %v1272_v51 = vpack.c.bf16 %v1183_v47, %v1183_v47 }
 0x470   : > { %v1295_v52 = vsel %vm1290_vm5, %v1272_v51, 0 }
 0x471   : > { %2655 = vmatpush3.bf16.xpose.msra.mxu1 %v1295_v52 }
 0x472   : > { %1255 = vrot.lane.b32.xlu1 %v1127_v40, %s3416_s12  ;;  %1266 = vrot.lane.b32.xlu0 %v1183_v47, %s3417_s14 }
 0x473   : > { %2666 = vmatprep.subr.bf16.mxu1 %v3413_v26 }
 0x476   : > { %1252 = vrot.lane.b32.xlu0 %v1127_v40, %s3417_s14 }
 0x478   : > { %2657 = vmatmul.mubr.msk.bf16.vlgmr.msra.gmra.mrb[8].mxu1 %vm1290_vm5, %v1258_v53 }
 0x479   : > { %2668 = vmatprep.mubr.msk.bf16.mxu1 %vm3414_vm3, %v3413_v26 }
 0x4d8   : > { %v1250_v54 = vpop.permute.xlu1 %1249 }
 0x4d9   : > { %v1259_v63 = vpack.c.bf16 %v1250_v54, %v1250_v54 }
 0x4e0   : > { %v1264_v55 = vpop.permute.xlu0 %1263  ;;  %v1270_v58 = vpop.permute.xlu1 %1269 }
 0x4e1   : > { %v1273_v56 = vpack.c.bf16 %v1264_v55, %v1264_v55  ;;  %v1275_v61 = vpack.c.bf16 %v1270_v58, %v1270_v58 }
 0x4e3   : > { %v1341_v57 = vsel %vm1290_vm5, %v1273_v56, 0  ;;  %v1433_v1 = vsel %vm1290_vm5, %v1275_v61, 0 }
 0x4e4   : > { %2661 = vmatpush3.bf16.xpose.msra.mxu0 %v1341_v57  ;;  %v1267_v59 = vpop.permute.xlu0 %1266  ;;  %v1256_v3 = vpop.permute.xlu1 %1255 }
 0x4e5   : > { %v1274_v60 = vpack.c.bf16 %v1267_v59, %v1267_v59  ;;  %2672 = vmatprep.subr.bf16.mxu0 %v3413_v26  ;;  %v1261_v4 = vpack.c.bf16 %v1256_v3, %v1256_v3 }
 0x4e7   : > { %v1387_v62 = vsel %vm1290_vm5, %v1274_v60, 0 }
 0x4e8   : > { %2667 = vmatpush3.bf16.xpose.msra.mxu1 %v1387_v62  ;;  %v1253_v0 = vpop.permute.xlu0 %1252 }
 0x4e9   : > { %2678 = vmatprep.subr.bf16.mxu1 %v3413_v26  ;;  %v1260_v2 = vpack.c.bf16 %v1253_v0, %v1253_v0 }
 0x4eb   : > { %2663 = vmatmul.mubr.msk.bf16.vlgmr.msra.gmra.mrb[4].mxu0 %vm1290_vm5, %v1259_v63 }
 0x4ec   : > { %2673 = vmatpush3.bf16.xpose.msra.mxu0 %v1433_v1  ;;  %2674 = vmatprep.mubr.msk.bf16.mxu0 %vm3414_vm3, %v3413_v26 }
 0x4ed   : > { %2684 = vmatprep.subr.bf16.mxu0 %v3413_v26 }
 0x4ef   : > { %2669 = vmatmul.mubr.msk.bf16.vlgmr.msra.gmra.mrb[12].mxu1 %vm1290_vm5, %v1260_v2 }
 0x4f0   : > { %2680 = vmatprep.mubr.msk.bf16.mxu1 %vm3414_vm3, %v3413_v26  ;;  %2679 = vmatpush3.bf16.msra.mxu1 %v1532_v13 }
 0x4f1   : > { %2690 = vmatprep.subr.bf16.mxu1 %v3413_v26 }
 0x4f3   : > { %2675 = vmatmul.mubr.msk.bf16.vlgmr.msra.gmra.mrb[8].mxu0 %vm1290_vm5, %v1261_v4 }
 0x4f4   : > { %2686 = vmatprep.mubr.msk.bf16.mxu0 %vm3414_vm3, %v3413_v26 }
 0x54b   : > { %v1331_v14 = vpop.f32.mrb[8].mxu1 }
 0x54c   : > { %v1475_v15 = vmul.f32 0.35355338, %v1331_v14  ;;  %v2658_v16 = vpop.f32.mrb[9].mxu1 }
 0x54d   : > { %v1334_v17 = vpop.f32.mrb[10].mxu1 }
 0x54e   : > { %v2659_v18 = vpop.f32.mrb[11].mxu1  ;;  %v1479_v19 = vsel %vm1290_vm5, %v1475_v15, -inf }
 0x54f   : > { %1480 = vmax.xlane.f32.xlu0 %v1479_v19 }
 0x5be   : > { %v1377_v20 = vpop.f32.mrb[4].mxu0 }
 0x5bf   : > { %v1476_v21 = vmul.f32 0.35355338, %v1377_v20  ;;  %v2664_v22 = vpop.f32.mrb[5].mxu0 }
 0x5c0   : > { %v1380_v23 = vpop.f32.mrb[6].mxu0 }
 0x5c1   : > { %v2665_v24 = vpop.f32.mrb[7].mxu0  ;;  %v1482_v25 = vsel %vm1290_vm5, %v1476_v21, -inf }
 0x5c2   : > { %1483 = vmax.xlane.f32.xlu1 %v1482_v25  ;;  %v1423_v27 = vpop.f32.mrb[12].mxu1  ;;  %v1246_v25 = vld [vmem:[%s3942_s1 + $0x8] sm:$0xf] }
 0x5c3   : > { %v1477_v29 = vmul.f32 0.35355338, %v1423_v27  ;;  %v2670_v30 = vpop.f32.mrb[13].mxu1 }
 0x5c4   : > { %v1426_v31 = vpop.f32.mrb[14].mxu1 }
 0x5c5   : > { %v2671_v32 = vpop.f32.mrb[15].mxu1  ;;  %v1485_v33 = vsel %vm1290_vm5, %v1477_v29, -inf  ;;  %v1812_v31 = vsel %vm1530_vm6, %v1246_v25, 0 }
 0x5c6   : > { %v1469_v34 = vpop.f32.mrb[8].mxu0  ;;  %1486 = vmax.xlane.f32.xlu0 %v1485_v33 }
 0x5c7   : > { %v1478_v35 = vmul.f32 0.35355338, %v1469_v34  ;;  %v2676_v36 = vpop.f32.mrb[9].mxu0  ;;  %v1247_v34 = vld [vmem:[%s3942_s1 + $0xc] sm:$0xf] }
 0x5c8   : > { %v1472_v37 = vpop.f32.mrb[10].mxu0 }
 0x5c9   : > { %v2677_v38 = vpop.f32.mrb[11].mxu0  ;;  %v1488_v39 = vsel %vm1290_vm5, %v1478_v35, -inf }
 0x5ca   : > { %1489 = vmax.xlane.f32.xlu0 %v1488_v39  ;;  %v1858_v38 = vsel %vm1530_vm6, %v1247_v34, 0  ;;  %v2947_v34 = vld [vmem:[%s3982_s6 + $0x10] sm:$0xff]  }
 0x5d3   : > { %1277 = vrot.lane.b32.xlu1 %v4065_v8, %s3415_s11 }
 0x5dc   : > { %v1481_v40 = vpop.xlane.xlu0 %1480 }
 0x5dd   : > { %v1491_v41 = vsub.f32 %v1475_v15, %v1481_v40  ;;  %v1244_v15 = vld [vmem:[%s3942_s1] sm:$0xf] }
 0x5de   : > { %v1720_v19 = vsel %vm1530_vm6, %v1244_v15, 0 }
 0x5df   : > { %v1495_v42 = vmul.f32 1.442695, %v1491_v41 }
 0x5e1   : > { %2949 = vpow2.f32 %v1495_v42 }
 0x5eb   : > { %v2950_v43 = vpop.eup %2949 }
 0x5ec   : > { %v1503_v44 = vsel %vm1290_vm5, %v2950_v43, 0.0 }
 0x5f7   : > { %1504 = vadd.xlane.f32.xlu1 %v1503_v44 }
 0x64f   : > { %v1484_v45 = vpop.xlane.xlu1 %1483 }
 0x650   : > { %v1492_v46 = vsub.f32 %v1476_v21, %v1484_v45  ;;  %v1245_v21 = vld [vmem:[%s3942_s1 + $0x4] sm:$0xf]  ;;  %s4406_s1 = sld [smem:[#allocation48_spill]] }
 0x651   : > { %v1766_v24 = vsel %vm1530_vm6, %v1245_v21, 0  ;;  %v2946_v21 = vld [vmem:[%s3982_s6 + $0x8] sm:$0xff]  }
 0x652   : > { %v1497_v47 = vmul.f32 1.442695, %v1492_v46 }
 0x653   : > { %v1278_v48 = vpop.permute.xlu1 %1277  ;;  %v1487_v49 = vpop.xlane.xlu0 %1486 }
 0x654   : > { %2951 = vpow2.f32 %v1497_v47  ;;  %v1287_v50 = vpack.c.bf16 %v1278_v48, %v1278_v48  ;;  %v1493_v51 = vsub.f32 %v1477_v29, %v1487_v49 }
 0x656   : > { %v1578_v52 = vsel %vm1530_vm6, %v1287_v50, 0  ;;  %v1499_v53 = vmul.f32 1.442695, %v1493_v51  ;;  %s4407_s26 = scalar_lea.vmem %s4406_s1, %s3953_s27 }
 0x657   : > { %2685 = vmatpush3.bf16.msra.mxu0 %v1578_v52  ;;  %v1490_v54 = vpop.xlane.xlu0 %1489 }
 0x658   : > { %2953 = vpow2.f32 %v1499_v53  ;;  %v1494_v55 = vsub.f32 %v1478_v35, %v1490_v54  ;;  %2696 = vmatprep.subr.bf16.mxu0 %v3413_v26 }
 0x65a   : > { %v1501_v56 = vmul.f32 1.442695, %v1494_v55 }
 0x65c   : > { %2955 = vpow2.f32 %v1501_v56 }
 0x65e   : > { %v2952_v57 = vpop.eup %2951 }
 0x65f   : > { %v1506_v58 = vsel %vm1290_vm5, %v2952_v57, 0.0 }
 0x660   : > { %1507 = vadd.xlane.f32.xlu0 %v1506_v58 }
 0x662   : > { %v2954_v59 = vpop.eup %2953 }
 0x663   : > { %v1509_v60 = vsel %vm1290_vm5, %v2954_v59, 0.0 }
 0x664   : > { %1510 = vadd.xlane.f32.xlu1 %v1509_v60 }
 0x666   : > { %v2956_v61 = vpop.eup %2955 }
 0x667   : > { %v1512_v62 = vsel %vm1290_vm5, %v2956_v61, 0.0 }
 0x668   : > { %1513 = vadd.xlane.f32.xlu0 %v1512_v62 }
 0x675   : > { %1283 = vrot.lane.b32.xlu1 %v4065_v8, %s3416_s12 }
 0x67e   : > { %1280 = vrot.lane.b32.xlu0 %v4065_v8, %s3417_s14 }
 0x684   : > { %v1505_v63 = vpop.xlane.xlu1 %1504 }
 0x685   : > { %2957 = vrcp.f32 %v1505_v63 }
 0x68f   : > { %v2958_v0 = vpop.eup %2957 }
 0x690   : > { %v1519_v1 = vmul.f32 %v2958_v0, %v2950_v43 }
 0x692   : > { %v1523_v2 = vpack.c.bf16 %v1519_v1, %v1519_v1 }
 0x694   : > { %2681 = vmatmul.mubr.msk.bf16.vlgmr.msra.gmra.mrb[16].mxu1 %vm1290_vm5, %v1523_v2 }
 0x695   : > { %2692 = vmatprep.mubr.msk.bf16.mxu1 %vm3414_vm3, %v3413_v26 }
 0x6ed   : > { %v1508_v3 = vpop.xlane.xlu0 %1507 }
 0x6ee   : > { %2959 = vrcp.f32 %v1508_v3 }
 0x6f1   : > { %v1511_v4 = vpop.xlane.xlu1 %1510 }
 0x6f2   : > { %2961 = vrcp.f32 %v1511_v4 }
 0x6f5   : > { %v1514_v5 = vpop.xlane.xlu0 %1513  ;;  %v1284_v6 = vpop.permute.xlu1 %1283 }
 0x6f6   : > { %2963 = vrcp.f32 %v1514_v5  ;;  %v1289_v9 = vpack.c.bf16 %v1284_v6, %v1284_v6  ;;  %v2553_v6 = vld [vmem:[%s4407_s26] ss:$0 sm:$0xff] }
 0x6f8   : > { %v2960_v7 = vpop.eup %2959  ;;  %v1670_v17 = vsel %vm1530_vm6, %v1289_v9, 0 }
 0x6f9   : > { %v1520_v8 = vmul.f32 %v2960_v7, %v2952_v57  ;;  %v1281_v10 = vpop.permute.xlu0 %1280 }
 0x6fa   : > { %v1288_v11 = vpack.c.bf16 %v1281_v10, %v1281_v10 }
 0x6fb   : > { %v1524_v12 = vpack.c.bf16 %v1520_v8, %v1520_v8 }
 0x6fc   : > { %v2962_v13 = vpop.eup %2961  ;;  %v1624_v14 = vsel %vm1530_vm6, %v1288_v11, 0 }
 0x6fd   : > { %v1521_v16 = vmul.f32 %v2962_v13, %v2954_v59  ;;  %2687 = vmatmul.mubr.msk.bf16.vlgmr.msra.gmra.mrb[12].mxu0 %vm1290_vm5, %v1524_v12  ;;  %2691 = vmatpush3.bf16.msra.mxu1 %v1624_v14 }
 0x6fe   : > { %2697 = vmatpush3.bf16.msra.mxu0 %v1670_v17  ;;  %2698 = vmatprep.mubr.msk.bf16.mxu0 %vm3414_vm3, %v3413_v26 }
 0x6ff   : > { %v1525_v18 = vpack.c.bf16 %v1521_v16, %v1521_v16  ;;  %2702 = vmatprep.subr.bf16.mxu1 %v3413_v26  ;;  %2708 = vmatprep.subr.bf16.mxu0 %v3413_v26 }
 0x700   : > { %v2964_v20 = vpop.eup %2963 }
 0x701   : > { %v1522_v22 = vmul.f32 %v2964_v20, %v2956_v61  ;;  %2693 = vmatmul.mubr.msk.bf16.vlgmr.msra.gmra.mrb[20].mxu1 %vm1290_vm5, %v1525_v18  ;;  %v2944_v20 = vld [vmem:[%s3990_s29 + $0x8] sm:$0xff]  }
 0x702   : > { %2703 = vmatpush3.bf16.msra.mxu1 %v1720_v19  ;;  %2704 = vmatprep.mubr.msk.bf16.mxu1 %vm3414_vm3, %v3413_v26  ;;  %v2943_v19 = vld [vmem:[%s3990_s29] sm:$0xff]  }
 0x703   : > { %v1526_v23 = vpack.c.bf16 %v1522_v22, %v1522_v22  ;;  %2714 = vmatprep.subr.bf16.mxu1 %v3413_v26 }
 0x705   : > { %2699 = vmatmul.mubr.msk.bf16.vlgmr.msra.gmra.mrb[16].mxu0 %vm1290_vm5, %v1526_v23 }
 0x706   : > { %2709 = vmatpush3.bf16.msra.mxu0 %v1766_v24  ;;  %2710 = vmatprep.mubr.msk.bf16.mxu0 %vm3414_vm3, %v3413_v26 }
 0x707   : > { %2720 = vmatprep.subr.bf16.mxu0 %v3413_v26 }
 0x767   : > { %v1568_v27 = vpop.f32.mrb[16].mxu1 }
 0x768   : > { %v1712_v29 = vpack.c.bf16 %v1568_v27, %v1568_v27  ;;  %v2682_v30 = vpop.f32.mrb[17].mxu1  ;;  %v2554_v27 = vld [vmem:[%s797_s15] ss:$0 sm:$0xff] }
 0x769   : > { %v1571_v32 = vpop.f32.mrb[18].mxu1  ;;  %v2555_v30 = vld [vmem:[%s805_s23] ss:$0 sm:$0xff] }
 0x76a   : > { %v2683_v33 = vpop.f32.mrb[19].mxu1  ;;  %2705 = vmatmul.mubr.msk.bf16.vlgmr.msra.gmra.mrb[24].mxu1 %vm1290_vm5, %v1712_v29 }
 0x76b   : > { %2715 = vmatpush3.bf16.msra.mxu1 %v1812_v31  ;;  %2716 = vmatprep.mubr.msk.bf16.mxu1 %vm3414_vm3, %v3413_v26 }
 0x76c   : > { %2726 = vmatprep.subr.bf16.mxu1 %v3413_v26 }
 0x7d0   : > { %v1614_v35 = vpop.f32.mrb[12].mxu0 }
 0x7d1   : > { %v1713_v36 = vpack.c.bf16 %v1614_v35, %v1614_v35  ;;  %v2688_v37 = vpop.f32.mrb[13].mxu0  ;;  %v2948_v35 = vld [vmem:[%s3982_s6 + $0x18] sm:$0xff]  }
 0x7d2   : > { %v1617_v39 = vpop.f32.mrb[14].mxu0 }
 0x7d3   : > { %v2689_v40 = vpop.f32.mrb[15].mxu0  ;;  %2711 = vmatmul.mubr.msk.bf16.vlgmr.msra.gmra.mrb[20].mxu0 %vm1290_vm5, %v1713_v36  ;;  %v2556_v36 = vld [vmem:[%s822_s4] ss:$0 sm:$0xff] }
 0x7d4   : > { %v1660_v41 = vpop.f32.mrb[20].mxu1  ;;  %2721 = vmatpush3.bf16.msra.mxu0 %v1858_v38  ;;  %2722 = vmatprep.mubr.msk.bf16.mxu0 %vm3414_vm3, %v3413_v26 }
 0x7d5   : > { %v1714_v42 = vpack.c.bf16 %v1660_v41, %v1660_v41  ;;  %v2694_v43 = vpop.f32.mrb[21].mxu1  ;;  %2734 = vmatprep.subr.bf16.mxu0 %v3413_v26 }
 0x7d6   : > { %v1663_v44 = vpop.f32.mrb[22].mxu1 }
 0x7d7   : > { %v2695_v45 = vpop.f32.mrb[23].mxu1  ;;  %2717 = vmatmul.mubr.msk.bf16.vlgmr.msra.gmra.mrb[28].mxu1 %vm1290_vm5, %v1714_v42  ;;  %v2560_v44 = vld [vmem:[%s830_s9] ss:$0 sm:$0xff] }
 0x7d8   : > { %v1706_v46 = vpop.f32.mrb[16].mxu0  ;;  %2730 = vmatprep.mubr.msk.bf16.mxu1 %vm3414_vm3, %v3413_v26  ;;  %2727 = vmatpush3.bf16.msra.mxu1 %v2943_v19 }
 0x7d9   : > { %v1715_v47 = vpack.c.bf16 %v1706_v46, %v1706_v46  ;;  %v2700_v48 = vpop.f32.mrb[17].mxu0  ;;  %2728 = vmatprep.subr.bf16.mxu1 %v3413_v26 }
 0x7da   : > { %v1709_v49 = vpop.f32.mrb[18].mxu0 }
 0x7db   : > { %v2701_v50 = vpop.f32.mrb[19].mxu0  ;;  %2723 = vmatmul.mubr.msk.bf16.vlgmr.msra.gmra.mrb[24].mxu0 %vm1290_vm5, %v1715_v47 }
 0x7dc   : > { %2742 = vmatprep.mubr.msk.bf16.mxu0 %vm3414_vm3, %v3413_v26  ;;  %2729 = vmatpush3.bf16.msra.mxu1 %v2944_v20 }
 0x83d   : > { %v1756_v51 = vpop.f32.mrb[24].mxu1 }
 0x83e   : > { %v2706_v52 = vpop.f32.mrb[25].mxu1  ;;  %v1900_v56 = vsel %vm1088_vm4, %v1756_v51, 0.0 }
 0x83f   : > { %v1759_v53 = vpop.f32.mrb[26].mxu1 }
 0x840   : > { %v2707_v54 = vpop.f32.mrb[27].mxu1 }
 0x8a6   : > { %v1802_v55 = vpop.f32.mrb[20].mxu0 }
 0x8a7   : > { %v1901_v57 = vsel %vm1088_vm4, %v1802_v55, 0.0  ;;  %v2712_v58 = vpop.f32.mrb[21].mxu0 }
 0x8a8   : > { %v1902_v59 = vadd.f32 %v1901_v57, %v1900_v56  ;;  %v1805_v60 = vpop.f32.mrb[22].mxu0 }
 0x8a9   : > { %v2713_v61 = vpop.f32.mrb[23].mxu0  ;;  %v2566_v60 = vld [vmem:[%s955_s25] ss:$0 sm:$0xff] }
 0x8aa   : > { %v1848_v62 = vpop.f32.mrb[28].mxu1 }
 0x8ab   : > { %v1903_v63 = vsel %vm1088_vm4, %v1848_v62, 0.0  ;;  %v2718_v0 = vpop.f32.mrb[29].mxu1  ;;  %v2567_v62 = vld [vmem:[%s958_s13] ss:$0 sm:$0xff] }
 0x8ac   : > { %v1904_v1 = vadd.f32 %v1903_v63, %v1902_v59  ;;  %v1851_v2 = vpop.f32.mrb[30].mxu1 }
 0x8ad   : > { %v2719_v3 = vpop.f32.mrb[31].mxu1  ;;  %v3418_v2 = vmov (!%p2568_p7), 0.0  }
 0x8ae   : > { %v1894_v4 = vpop.f32.mrb[24].mxu0 }
 0x8af   : > { %v1905_v5 = vsel %vm1088_vm4, %v1894_v4, 0.0  ;;  %v2724_v7 = vpop.f32.mrb[25].mxu0 }
 0x8b0   : > { %v1906_v8 = vadd.f32 %v1905_v5, %v1904_v1  ;;  %v1897_v9 = vpop.f32.mrb[26].mxu0 }
 0x8b1   : > { %v2725_v10 = vpop.f32.mrb[27].mxu0 }
 0x8b2   : > { %v1914_v11 = vadd.f32 %v2553_v6, %v1906_v8 }
 0x8b4   : > { %v1915_v12 = vadd.f32 %v1914_v11, %v4008_v28  ;;  %v2945_v28 = vld [vmem:[%s3982_s6] sm:$0xff]   ;;  %s4411_s6 = sld [smem:[#allocation57_spill]] (!%p2568_p7) }
 0x8b5   : > { %2735 = vmatpush3.bf16.msra.mxu0 %v2945_v28 }
 0x8b6   : > { %v1918_v13 = vsel %vm1088_vm4, %v1915_v12, 0.0  ;;  %2736 = vmatprep.subr.bf16.mxu0 %v3413_v26 }
 0x8b7   : > { %1919 = vadd.xlane.f32.xlu1 %v1918_v13 }
 0x8b9   : > { %2737 = vmatpush3.bf16.msra.mxu0 %v2946_v21 }
 0x8ba   : > { %2738 = vmatprep.subr.bf16.mxu0 %v3413_v26  ;;  %v2969_v1 = vld [vmem:[%s4411_s6] sm:$0xff] (!%p2568_p7)   ;;  %v2970_v3 = vld [vmem:[%s4411_s6 + $0x8] sm:$0xff] (!%p2568_p7)  }
 0x8bd   : > { %2739 = vmatpush3.bf16.msra.mxu0 %v2947_v34 }
 0x8be   : > { %2740 = vmatprep.subr.bf16.mxu0 %v3413_v26 }
 0x8c1   : > { %2741 = vmatpush3.bf16.msra.mxu0 %v2948_v35 }
 0x8c2   : > { %2746 = vmatprep.subr.bf16.mxu0 (!%p2568_p7), %v3418_v2 }
 0x944   : > { %v1920_v14 = vpop.xlane.xlu1 %1919 }
 0x945   : > { %v1922_v15 = vmul.f32 0.03125, %v1920_v14  ;;  %v2148_v14 = vld [vmem:[%s4412_s8] sm:$0x1] (!%p2568_p7) }
 0x947   : > { %v1923_v16 = vsub.f32 %v1915_v12, %v1922_v15 }
 0x949   : > { %v1924_v17 = vmul.f32 %v1923_v16, %v1923_v16 }
 0x94b   : > { %v1925_v18 = vsel %vm1088_vm4, %v1924_v17, 0.0 }
 0x94c   : > { %1926 = vadd.xlane.f32.xlu0 %v1925_v18 }
 0x9d9   : > { %v1927_v22 = vpop.xlane.xlu0 %1926 }
 0x9da   : > { %v1928_v23 = vmul.f32 0.03125, %v1927_v22 }
 0x9dc   : > { %v1929_v24 = vadd.f32 1e-05, %v1928_v23 }
 0x9de   : > { %2965 = vrsqrt.f32 %v1929_v24 }
 0x9e8   : > { %v2966_v25 = vpop.eup %2965 }
 0x9e9   : > { %v1931_v29 = vmul.f32 %v2966_v25, %v1923_v16 }
 0x9eb   : > { %v1938_v31 = vmul.f32 %v2554_v27, %v1931_v29 }
 0x9ed   : > { %v1945_v32 = vadd.f32 %v2555_v30, %v1938_v31 }
 0x9ef   : > { %v1946_v33 = vpack.c.bf16 %v1945_v32, %v1945_v32 }
 0x9f1   : > { %2731 = vmatmul.mubr.msk.bf16.vlgmr.msra.gmra.mrb[32].mxu1 %vm1088_vm4, %v1946_v33 }
 0xac4   : > { %v2007_v37 = vpop.f32.mrb[32].mxu1 }
 0xac5   : > { %v2008_v38 = vadd.f32 %v2556_v36, %v2007_v37  ;;  %v2732_v39 = vpop.f32.mrb[33].mxu1 }
 0xac6   : > { %v2010_v40 = vpop.f32.mrb[34].mxu1 }
 0xac7   : > { %v2013_v41 = vmax.f32 %v2008_v38, 0.0  ;;  %v2733_v42 = vpop.f32.mrb[35].mxu1 }
 0xac9   : > { %v2014_v43 = vpack.c.bf16 %v2013_v41, %v2013_v41 }
 0xacb   : > { %2743 = vmatmul.mubr.msk.bf16.vlgmr.msra.gmra.mrb[28].mxu0 %vm2054_vm7, %v2014_v43 }
 0xacc   : > { %2747 = vmatpush3.bf16.msra.mxu0 (!%p2568_p7), %v2969_v1  ;;  %2750 = vmatprep.mubr.msk.bf16.mxu0 (!%p2568_p7), %vm3419_vm8, %v3418_v2 }
 0xacd   : > { %2748 = vmatprep.subr.bf16.mxu0 (!%p2568_p7), %v3418_v2 }
 0xad0   : > { %2749 = vmatpush3.bf16.msra.mxu0 (!%p2568_p7), %v2970_v3 }
 0xb9e   : > { %v2092_v45 = vpop.f32.mrb[28].mxu0 }
 0xb9f   : > { %v2093_v46 = vadd.f32 %v2560_v44, %v2092_v45  ;;  %v2744_v47 = vpop.f32.mrb[29].mxu0 }
 0xba0   : > { %v2095_v48 = vpop.f32.mrb[30].mxu0 }
 0xba1   : > { %v2745_v26 = vpop.f32.mrb[31].mxu0  ;;  %v2098_v49 = vadd.f32 %v2093_v46, %v1945_v32 }
 0xba3   : > { %v2101_v50 = vsel %vm1088_vm4, %v2098_v49, 0.0 }
 0xba4   : > { %2102 = vadd.xlane.f32.xlu0 %v2101_v50 }
 0xc31   : > { %v2103_v51 = vpop.xlane.xlu0 %2102 }
 0xc32   : > { %v2104_v52 = vmul.f32 0.03125, %v2103_v51 }
 0xc34   : > { %v2105_v53 = vsub.f32 %v2098_v49, %v2104_v52 }
 0xc36   : > { %v2106_v54 = vmul.f32 %v2105_v53, %v2105_v53 }
 0xc38   : > { %v2107_v55 = vsel %vm1088_vm4, %v2106_v54, 0.0 }
 0xc39   : > { %2108 = vadd.xlane.f32.xlu1 %v2107_v55 }
 0xcc6   : > { %v2109_v56 = vpop.xlane.xlu1 %2108 }
 0xcc7   : > { %v2110_v57 = vmul.f32 0.03125, %v2109_v56 }
 0xcc9   : > { %v2111_v58 = vadd.f32 1e-05, %v2110_v57 }
 0xccb   : > { %2967 = vrsqrt.f32 %v2111_v58 }
 0xcd5   : > { %v2968_v59 = vpop.eup %2967 }
 0xcd6   : > { %v2113_v61 = vmul.f32 %v2968_v59, %v2105_v53  ;;  %2132 = sbr.rel (%p2568_p7) target bundleno = 3532 (0xdcc), region = 144 }
 0xcd8   : > { %v2120_v63 = vmul.f32 %v2566_v60, %v2113_v61 }
 0xcda   : > { %v2127_v0 = vadd.f32 %v2567_v62, %v2120_v63 }
 0xcdc   : > { %2128 = vst.msk [vmem:[#allocation2] sm:$0xff] %vm1088_vm4, %v2127_v0 }
 0xce3   : > { %v2133_v4 = vld [vmem:[#allocation2] sm:$0xff] }
 0xce4   : > { %v2134_v5 = vsel %vm1088_vm4, %v2133_v4, 0.0 }
 0xce5   : > { %v2135_v6 = vrot.slane %v2134_v5, 4 }
 0xce7   : > { %v2136_v7 = vadd.f32 %v2135_v6, %v2134_v5 }
 0xce9   : > { %v2137_v8 = vrot.slane %v2136_v7, 2 }
 0xceb   : > { %v2138_v9 = vadd.f32 %v2137_v8, %v2136_v7 }
 0xced   : > { %v2139_v10 = vrot.slane %v2138_v9, 1 }
 0xcef   : > { %v2140_v11 = vadd.f32 %v2139_v10, %v2138_v9 }
 0xcf1   : > { %v2142_v12 = vmul.f32 0.125, %v2140_v11 }
 0xcf3   : > { %v2143_v13 = vpack.c.bf16 %v2142_v12, %v2142_v12 }
 0xcf5   : > { %2751 = vmatmul.mubr.msk.bf16.vlgmr.msra.gmra.mrb[0].mxu0 %vm1088_vm4, %v2143_v13 }
 0xdc8   : > { %v2198_v15 = vpop.f32.mrb[0].mxu0 }
 0xdc9   : > { %v2199_v16 = vadd.f32 %v2198_v15, %v2148_v14  ;;  %v2752_v17 = vpop.f32.mrb[1].mxu0 }
 0xdca   : > { %v2201_v18 = vpop.f32.mrb[2].mxu0 }
 0xdcb   : > { %2204 = vst [vmem:[%s3996_s5] sm:$0x1] %v2199_v16  ;;  %v2753_v19 = vpop.f32.mrb[3].mxu0 }
 0xdcc PF: > { %s4413_s13 = sld [smem:[#allocation29_spill]]  ;;  %s4414_s15 = sld [smem:[#allocation24_spill]] }
 0xdcd   : > { %s4415_s23 = sld [smem:[#allocation34_spill]]  ;;  %s2218_s14 = sshll.u32 %s3996_s5, 4  ;;  %s2219_s14 = int_to_ptr.vmem [resolvable:$true] %s2218_s14 }
 0xdce   : > { %s4416_s11 = sld [smem:[#allocation59_spill]]  ;;  %s3263_s1 = scalar_lea.vmem %s2219_s14, 16 }
 0xdcf   : > { %p3264_p3 = scmp.ne.s32.totalorder %s2219_s14, %s3263_s1  ;;  %s3420_s26 = smov [#allocation17]  }
 0xdd0   : > { %s3267_s3 = sshll.u32 %s3420_s26, 4  ;;  %s3268_s3 = int_to_ptr.vmem [resolvable:$false] %s3267_s3 }
 0xdd1   : > { %s3269_s2 = scalar_lea.vmem %s3268_s3, 32  ;;  %p3270_p0 = scmp.lt.s32.totalorder %s2219_s14, %s3268_s3 }
 0xdd2   : > { %s2572_s4 = sshll.u32 %s4413_s13, 4  ;;  %s4417_s16 = sand.u32 1, %s4414_s15  }
 0xdd3   : > { %s2206_s7 = scalar_lea.sflag [#allocation5], %s4417_s16  ;;  %p4418_p12 = scmp.ne.s32.totalorder %s4415_s23, 0 }
 0xdd4   : > { %s4188_s12 = scalar_lea.hbm %s4416_s11, %s2572_s4  ;;  %p3271_p5 = scmp.lt.s32.totalorder %s3269_s2, %s3263_s1 }
 0xdd5   : > { %p3265_p6 = pnand %p3264_p3, %p4418_p12 }
 0xdd6   : > { %p3272_p11 = por %p3271_p5, %p3270_p0 }
 0xdd7   : > { %p3266_p8 = pneg %p3265_p6 }
 0xdd9   : > { %p3273_p10 = pnand %p3272_p11, %p3266_p8 }
 0xddb   : > { %3276 = shalt.err (!%p3273_p10)
}
 0xddc   : > { %s3277_s5 = scalar_lea.hbm %s4188_s12, 16  ;;  %s3281_s29 = scalar_lea.hbm %s4416_s11, 32 }
 0xddd   : > { %p3278_p1 = scmp.ne.s32.totalorder %s4188_s12, %s3277_s5  ;;  %p3282_p4 = scmp.lt.u32.totalorder %s4188_s12, %s4416_s11 }
 0xdde   : > { %p3283_p9 = scmp.lt.u32.totalorder %s3281_s29, %s3277_s5  ;;  %p3285_p3 = scmp.lt.u32.totalorder %s3277_s5, %s4188_s12 }
 0xddf   : > { %p3279_p13 = pnand %p3278_p1, %p4418_p12 }
 0xde0   : > { %p3284_p7 = por %p3283_p9, %p3282_p4 }
 0xde1   : > { %p3280_p2 = pneg %p3279_p13 }
 0xde2   : > { %p3286_p6 = por %p3285_p3, %p3284_p7 }
 0xde4   : > { %p3287_p8 = pnand %p3286_p6, %p3280_p2 }
 0xde6   : > { %3290 = shalt.err (!%p3287_p8)
}
 0xde7   : > { %2783 = dma.vmem_to_hbm [thread:$0]  (%p4418_p12), %s2219_s14, 16, %s4188_s12, %s2206_s7  }
 0xde8 PF: > { %s4419_s30 = sld [smem:[#allocation31_spill]]  ;;  %s4420_s0 = sld [smem:[#allocation23_spill]] }
 0xde9   : > { %s4421_s25 = sld [smem:[#allocation35_spill]] }
 0xdee   : > { %p2830_p0 = scmp.ge.s32.totalorder %s4419_s30, 2  ;;  %s2230_s22 = sand.u32 1, %s4420_s0  }
 0xdef   : > { %p4422_p5 = scmp.ne.s32.totalorder %s4421_s25, 0  ;;  %s2231_s27 = scalar_lea.sflag [#allocation5], %s2230_s22 }
 0xdf1   : > { %p2818_p11 = pnand %p2830_p0, %p4422_p5 }
 0xdf3   : > { %3352 = dma.done.wait (!%p2818_p11), %s2231_s27, 16  }
 0xdf4   : > { %3354 = vsyncadd (!%p2818_p11), %s2231_s27, 4294967280  ;;  %s35_s3 = sadd.s32 1, %s4419_s30   ;;  %s4423_s0 = sld [smem:[#allocation24_spill]] }
 0xdf5   : > { %p32_p10 = scmp.ge.s32.totalorder %s35_s3, 6   ;;  %s4424_s30 = sld [smem:[#allocation25_spill]] }
 0xdf6   : > { %s4425_s20 = sld [smem:[#allocation39_spill]]  ;;  %s4426_s21 = sld [smem:[#allocation26_spill]] }
 0xdf7   : > { %s4427_s1 = sld [smem:[#allocation27_spill]]  ;;  %s4428_s22 = sld [smem:[#allocation38_spill]] }
 0xdf8   : > { %s4429_s23 = sld [smem:[#allocation30_spill]]  ;;  %s4430_s28 = sld [smem:[#allocation36_spill]] }
 0xdf9   : > { %s4431_s25 = sld [smem:[#allocation37_spill]]  ;;  %s4432_s2 = smov %s3389_s24 }
 0xdfa   :  { %34 = sbr.rel (!%p32_p10) target bundleno = 31 (0x1f), region = 240 }
 0xdfe   : > { %s4433_s24 = smov %s4430_s28 }
 0xe01   :  { %2235 = vsyncpa [#allocation4], 1 }
 0xe02   :  { %2237 = vsyncpa [#allocation4 + $0x1], 1 }
 0xe03   :  { %2238 = vsyncpa [#allocation7], 1 }
 0xe04   :  { %2239 = vsyncpa [#allocation10], 1 }
 0xe05   :  { %2240 = vsyncpa [#allocation5], 1 }
 0xe06   :  { %2242 = vsyncpa [#allocation5 + $0x1], 1 }

</bundles_post_ra>
